<compile_context>
chip_gen: v7x
topology: tpu7x:2x2x1
jax: 0.10.0
libtpu: 0.0.40
codegen_flags: <defaults>
</compile_context>

<pallas_src>
import math
from functools import partial

import jax
import jax.numpy as jnp
from jax.experimental import pallas as pl
from jax.experimental.pallas import tpu as pltpu

# Matmul operand dtype.  f32 matches the PyTorch reference numerics; set to jnp.bfloat16
# on v6e/v7x for ~2x MXU throughput and half the HBM/VMEM traffic (accumulation stays
# f32 via preferred_element_type; softmax / LayerNorm are always done in f32).
MATMUL_DTYPE = jnp.float32

_F32B = 4
_VMEM_FLOOR = 32 * 1024 * 1024   # never request below the largest per-chip default limit
_VMEM_CEIL = 96 * 1024 * 1024    # stay under 128 MiB chips; only reached at prod sizes


def _clamp_vmem(nbytes):
    return int(min(max(nbytes, _VMEM_FLOOR), _VMEM_CEIL))


def _mm(a, b):
    """2-D matmul on the MXU with f32 accumulation (operands cast to MATMUL_DTYPE)."""
    return jnp.dot(a.astype(MATMUL_DTYPE), b.astype(MATMUL_DTYPE),
                   preferred_element_type=jnp.float32)


def _mm_nt(a, b):
    """a [m,k] x b [n,k]^T -> [m,n]: contract last dims of both (no in-kernel transpose)."""
    return jax.lax.dot_general(a.astype(MATMUL_DTYPE), b.astype(MATMUL_DTYPE),
                               (((1,), (1,)), ((), ())),
                               preferred_element_type=jnp.float32)


def _layer_norm(z, gamma, beta, eps=1e-5):
    """LayerNorm epilogue with single-pass (sum, sum-of-squares) statistics; biased var."""
    d = z.shape[-1]
    s1 = jnp.sum(z, axis=-1, keepdims=True)
    s2 = jnp.sum(z * z, axis=-1, keepdims=True)
    mu = s1 * (1.0 / d)
    var = s2 * (1.0 / d) - mu * mu
    return (z - mu) * jax.lax.rsqrt(var + eps) * gamma + beta


# ------------------------------------------------------------------ kernels

def _mha_ln_kernel(*refs, num_heads, self_attn):
    """Fused per-(batch, q-tile) block: LayerNorm(xq + W_out . Attn(xq, xkv, xkv))."""
    if self_attn:
        (xq_ref, wq_ref, bq_ref, wkv_ref, bkv_ref, wo_ref, bo_ref,
         g_ref, bln_ref, o_ref, kv_ref) = refs
        xkv_ref = xq_ref                       # single activation stream for self-attn
    else:
        (xq_ref, xkv_ref, wq_ref, bq_ref, wkv_ref, bkv_ref, wo_ref, bo_ref,
         g_ref, bln_ref, o_ref, kv_ref) = refs

    qi = pl.program_id(1)

    # K|V projection for the whole KV sequence, once per batch, into persistent scratch.
    @pl.when(qi == 0)
    def _():
        xkv = xkv_ref[0]                                           # [Sk, D]
        kv_ref[...] = _mm(xkv, wkv_ref[...]) + bkv_ref[...]        # [Sk, 2D]

    xq = xq_ref[0]                                                 # [tq, D]
    D = xq.shape[-1]
    dk = D // num_heads
    scale = 1.0 / math.sqrt(dk)

    q = _mm(xq, wq_ref[...]) + bq_ref[...]                         # [tq, D]
    kv = kv_ref[...]                                               # [Sk, 2D]
    wo = wo_ref[...]                                               # [D, D]

    # Per-head attention with the output projection accumulated per head:
    #   out = sum_h softmax(q_h k_h^T * scale) v_h @ W_out[h*dk:(h+1)*dk, :]
    # No lane-axis concat of dk-wide head slabs -> no cross-lane relayout copies; the
    # extra per-head [tq,dk]x[dk,D] matmuls ride the MXU slot and stay lane-dense.
    acc = jnp.zeros((xq.shape[0], D), jnp.float32)
    for h in range(num_heads):                                     # static unroll
        qh = q[:, h * dk:(h + 1) * dk]                             # [tq, dk]
        kh = kv[:, h * dk:(h + 1) * dk]                            # [Sk, dk]
        vh = kv[:, D + h * dk:D + (h + 1) * dk]                    # [Sk, dk]
        s = _mm_nt(qh, kh) * scale                                 # [tq, Sk]
        m = jnp.max(s, axis=-1, keepdims=True)
        e = jnp.exp(s - m)
        p = e / jnp.sum(e, axis=-1, keepdims=True)                 # exact softmax
        ctx = _mm(p, vh)                                           # [tq, dk]
        acc = acc + _mm(ctx, wo[h * dk:(h + 1) * dk, :])           # [tq, D]

    z = xq + acc + bo_ref[...]
    o_ref[0] = _layer_norm(z, g_ref[...], bln_ref[...])


def _ffn_ln_kernel(x_ref, w1_ref, b1_ref, w2_ref, b2_ref, g_ref, bln_ref, o_ref):
    """Fused FFN block for a row tile: LayerNorm(x + W2 relu(W1 x + b1) + b2)."""
    x = x_ref[...]
    h = jnp.maximum(_mm(x, w1_ref[...]) + b1_ref[...], 0.0)
    f = _mm(h, w2_ref[...]) + b2_ref[...]
    o_ref[...] = _layer_norm(x + f, g_ref[...], bln_ref[...])


def _linear_kernel(x_ref, w_ref, b_ref, o_ref):
    o_ref[...] = _mm(x_ref[...], w_ref[...]) + b_ref[...]


# ------------------------------------------------------------------ wrappers

def mha_block(p, x_q, x_kv, gamma, beta, num_heads, *, self_attn=False, q_tile=256):
    """x_q: [B, Sq, D] (queries + residual), x_kv: [B, Sk, D] -> [B, Sq, D]."""
    B, Sq, D = x_q.shape
    Sk = x_kv.shape[1]
    tq = Sq if Sq <= q_tile else q_tile
    nq = pl.cdiv(Sq, tq)
    # Self-attention: pass x once (single activation DMA / VMEM buffer) when the whole
    # sequence fits one query tile; otherwise fall back to the tiled two-input path.
    single_input = self_attn and nq == 1

    act_spec_q = pl.BlockSpec((1, tq, D), lambda b, qi: (b, qi, 0))
    act_spec_kv = pl.BlockSpec((1, Sk, D), lambda b, qi: (b, 0, 0))   # DMA'd once per batch
    const = lambda b, qi: (0, 0)
    weight_specs = [
        pl.BlockSpec((D, D), const),        # wq
        pl.BlockSpec((1, D), const),        # bq
        pl.BlockSpec((D, 2 * D), const),    # wkv (= [wk | wv])
        pl.BlockSpec((1, 2 * D), const),    # bkv
        pl.BlockSpec((D, D), const),        # wo
        pl.BlockSpec((1, D), const),        # bo
        pl.BlockSpec((1, D), const),        # ln gamma
        pl.BlockSpec((1, D), const),        # ln beta
    ]
    in_specs = ([act_spec_q] if single_input else [act_spec_q, act_spec_kv]) + weight_specs

    weight_args = (p["wq"], p["bq"].reshape(1, D),
                   p["wkv"], p["bkv"].reshape(1, 2 * D),
                   p["wo"], p["bo"].reshape(1, D),
                   gamma.reshape(1, D), beta.reshape(1, D))
    args = ((x_q,) if single_input else (x_q, x_kv)) + weight_args

    # Explicit scoped-VMEM budget (defaults are only 16 MiB v5e / 32 MiB v6e,v7x):
    # resident weights + double-buffered activation tiles + KV scratch + working set.
    wbytes = (4 * D * D + 6 * D) * _F32B
    abytes = (2 * tq * D + Sk * D) * _F32B
    work = (Sk * 2 * D + 3 * tq * D + tq * Sk) * _F32B
    vmem = _clamp_vmem(2 * (wbytes + abytes) + work + (4 << 20))

    return pl.pallas_call(
        partial(_mha_ln_kernel, num_heads=num_heads, self_attn=single_input),
        out_shape=jax.ShapeDtypeStruct((B, Sq, D), jnp.float32),
        grid=(B, nq),
        in_specs=in_specs,
        out_specs=pl.BlockSpec((1, tq, D), lambda b, qi: (b, qi, 0)),
        scratch_shapes=[pltpu.VMEM((Sk, 2 * D), jnp.float32)],   # persistent projected K|V
        compiler_params=pltpu.CompilerParams(
            # q-tile axis must stay "arbitrary": the KV scratch written at qi == 0 is
            # reused by the later q tiles of the same batch on the same core.
            dimension_semantics=("parallel", "arbitrary"),
            vmem_limit_bytes=vmem),
    )(*args)


def ffn_ln(x, w1, b1, w2, b2, gamma, beta, row_tile=512):
    """x: [N, D] -> LayerNorm(x + FFN(x)); row-tiled grid, resident weights."""
    N, D = x.shape
    d_ff = w1.shape[1]
    tm = N if N <= row_tile else row_tile
    const = lambda i: (0, 0)

    wbytes = (D * d_ff + d_ff + d_ff * D + 3 * D) * _F32B
    abytes = 2 * tm * D * _F32B
    work = (tm * d_ff + 2 * tm * D) * _F32B
    vmem = _clamp_vmem(2 * (wbytes + abytes) + work + (4 << 20))

    return pl.pallas_call(
        _ffn_ln_kernel,
        out_shape=jax.ShapeDtypeStruct((N, D), jnp.float32),
        grid=(pl.cdiv(N, tm),),
        in_specs=[
            pl.BlockSpec((tm, D), lambda i: (i, 0)),
            pl.BlockSpec((D, d_ff), const),
            pl.BlockSpec((1, d_ff), const),
            pl.BlockSpec((d_ff, D), const),
            pl.BlockSpec((1, D), const),
            pl.BlockSpec((1, D), const),
            pl.BlockSpec((1, D), const),
        ],
        out_specs=pl.BlockSpec((tm, D), lambda i: (i, 0)),
        compiler_params=pltpu.CompilerParams(
            dimension_semantics=("parallel",),
            vmem_limit_bytes=vmem),
    )(x, w1, b1.reshape(1, d_ff), w2, b2.reshape(1, D),
      gamma.reshape(1, D), beta.reshape(1, D))


def linear_tiled(x, w, b, row_tile=512, col_tile=512):
    """y = x @ w + b tiled over rows and output columns (lane-dense output blocks).
    Larger row tiles amortize the re-streamed [D, tn] vocab-weight HBM traffic."""
    N, D = x.shape
    V = w.shape[1]
    tm = N if N <= row_tile else row_tile
    tn = V if V <= col_tile else col_tile

    wbytes = (D * tn + tn) * _F32B
    abytes = (tm * D + tm * tn) * _F32B
    vmem = _clamp_vmem(2 * (wbytes + abytes) + (4 << 20))

    return pl.pallas_call(
        _linear_kernel,
        out_shape=jax.ShapeDtypeStruct((N, V), jnp.float32),
        grid=(pl.cdiv(N, tm), pl.cdiv(V, tn)),
        in_specs=[
            pl.BlockSpec((tm, D), lambda i, j: (i, 0)),
            pl.BlockSpec((D, tn), lambda i, j: (0, j)),
            pl.BlockSpec((1, tn), lambda i, j: (0, j)),
        ],
        out_specs=pl.BlockSpec((tm, tn), lambda i, j: (i, j)),
        compiler_params=pltpu.CompilerParams(
            dimension_semantics=("parallel", "parallel"),
            vmem_limit_bytes=vmem),
    )(x, w, b.reshape(1, V))


# ------------------------------------------------------------------ model glue

def decoder_layer(p, x, enc_output, num_heads):
    B, S, D = x.shape
    # self-attention + residual + norm1  (single fused kernel, x passed once when possible)
    x = mha_block(p["self_attn"], x, x, p["ln1_g"], p["ln1_b"], num_heads, self_attn=True)
    # cross-attention + residual + norm2 (single fused kernel)
    x = mha_block(p["cross_attn"], x, enc_output, p["ln2_g"], p["ln2_b"], num_heads)
    # feed-forward + residual + norm3    (single fused kernel)
    x = ffn_ln(x.reshape(B * S, D), p["w1"], p["b1"], p["w2"], p["b2"],
               p["ln3_g"], p["ln3_b"]).reshape(B, S, D)
    return x


def positional_encoding(max_len, d_model):
    position = jnp.arange(max_len, dtype=jnp.float32)[:, None]
    div_term = jnp.exp(
        jnp.arange(0, d_model, 2, dtype=jnp.float32) * (-math.log(10000.0) / d_model))
    pe = jnp.zeros((max_len, d_model), dtype=jnp.float32)
    pe = pe.at[:, 0::2].set(jnp.sin(position * div_term))
    pe = pe.at[:, 1::2].set(jnp.cos(position * div_term))
    return pe[None]  # [1, max_len, d_model]


def decoder_forward(params, token_ids, enc_output, num_heads):
    """token_ids: [B, S_tgt] int32, enc_output: [B, S_src, D] -> [B, S_tgt, V]."""
    B, S = token_ids.shape
    D = params["embedding"].shape[1]
    # embedding gather + positional encoding (glue; gather has no rectangular BlockSpec)
    x = params["embedding"][token_ids] + params["pos_enc"][:, :S, :]
    for layer_p in params["layers"]:
        x = decoder_layer(layer_p, x, enc_output, num_heads)
    logits = linear_tiled(x.reshape(B * S, D), params["fc_w"], params["fc_b"])
    return logits.reshape(B, S, params["fc_w"].shape[1])


# ------------------------------------------------------------------ param init

def init_params(key, d_model, num_heads, d_ff, num_layers, vocab, max_len):
    def dense(k, din, dout, scale=0.02):
        kw, kb = jax.random.split(k)
        return (scale * jax.random.normal(kw, (din, dout), jnp.float32),
                scale * jax.random.normal(kb, (dout,), jnp.float32))

    keys = jax.random.split(key, 2 + num_layers)
    params = {
        "embedding": 0.02 * jax.random.normal(keys[0], (vocab, d_model), jnp.float32),
        "pos_enc": positional_encoding(max_len, d_model),
        "layers": [],
    }
    params["fc_w"], params["fc_b"] = dense(keys[1], d_model, vocab)

    for li in range(num_layers):
        lk = jax.random.split(keys[2 + li], 12)

        def mha(ks):
            wq, bq = dense(ks[0], d_model, d_model)
            wk, bk = dense(ks[1], d_model, d_model)
            wv, bv = dense(ks[2], d_model, d_model)
            wo, bo = dense(ks[3], d_model, d_model)
            # pre-fuse K|V projection weights so one matmul covers both
            return dict(wq=wq, bq=bq,
                        wkv=jnp.concatenate([wk, wv], axis=1),
                        bkv=jnp.concatenate([bk, bv], axis=0),
                        wo=wo, bo=bo)

        w1, b1 = dense(lk[8], d_model, d_ff)
        w2, b2 = dense(lk[9], d_ff, d_model)
        params["layers"].append(dict(
            self_attn=mha(lk[0:4]),
            cross_attn=mha(lk[4:8]),
            w1=w1, b1=b1, w2=w2, b2=b2,
            ln1_g=jnp.ones((d_model,), jnp.float32), ln1_b=jnp.zeros((d_model,), jnp.float32),
            ln2_g=jnp.ones((d_model,), jnp.float32), ln2_b=jnp.zeros((d_model,), jnp.float32),
            ln3_g=jnp.ones((d_model,), jnp.float32), ln3_b=jnp.zeros((d_model,), jnp.float32),
        ))
    return params


# ------------------------------------------------------------------ main

if __name__ == "__main__":
    # NOTE: toy sizes for the smoke test; tune / benchmark only at production dims
    # (D, d_ff, Sq multiples of 128) where tile-size conclusions actually transfer.
    d_model, num_heads, d_ff, num_layers = 32, 4, 64, 2
    vocab, max_len = 64, 64
    B, S_tgt, S_src = 2, 8, 8

    key = jax.random.PRNGKey(0)
    k_param, k_tok, k_enc = jax.random.split(key, 3)

    params = init_params(k_param, d_model, num_heads, d_ff, num_layers, vocab, max_len)
    token_ids = jax.random.randint(k_tok, (B, S_tgt), 0, vocab, dtype=jnp.int32)
    enc_output = jax.random.normal(k_enc, (B, S_src, d_model), jnp.float32)

    fwd = jax.jit(decoder_forward, static_argnames=("num_heads",))
    out = fwd(params, token_ids, enc_output, num_heads=num_heads)
    out = jax.block_until_ready(out)
    assert out.shape == (B, S_tgt, vocab)
    assert bool(jnp.all(jnp.isfinite(out)))
    print("KERNEL_OK")
</pallas_src>

<mosaic_0001>
module attributes {stable_mosaic.version = 11 : i64} {
  func.func @_linear_kernel(%arg0: i32, %arg1: i32, %arg2: memref<16x32xf32, #tpu.memory_space<vmem>>, %arg3: memref<32x64xf32, #tpu.memory_space<vmem>>, %arg4: memref<1x64xf32, #tpu.memory_space<vmem>>, %arg5: memref<16x64xf32, #tpu.memory_space<vmem>>) attributes {dimension_semantics = [#tpu.dimension_semantics<parallel>, #tpu.dimension_semantics<parallel>], iteration_bounds = array<i64: 1, 1>, scalar_prefetch = 0 : i64, scratch_operands = 0 : i64, tpu.core_type = #tpu.core_type<tc>, window_params = [{transform_indices = @transform_0, window_bounds = array<i64: 16, 32>}, {transform_indices = @transform_1, window_bounds = array<i64: 32, 64>}, {transform_indices = @transform_2, window_bounds = array<i64: 1, 64>}, {transform_indices = @transform_3, window_bounds = array<i64: 16, 64>}]} {
    %c0 = arith.constant 0 : index
    %c0_0 = arith.constant 0 : index
    %0 = vector.load %arg2[%c0, %c0_0] : memref<16x32xf32, #tpu.memory_space<vmem>>, vector<16x32xf32>
    %c0_1 = arith.constant 0 : index
    %c0_2 = arith.constant 0 : index
    %1 = vector.load %arg3[%c0_1, %c0_2] : memref<32x64xf32, #tpu.memory_space<vmem>>, vector<32x64xf32>
    %cst = arith.constant dense<0.000000e+00> : vector<16x64xf32>
    %2 = tpu.matmul %0, %1, %cst {dimension_numbers = #tpu.dot_dimension_numbers<[1], [0], [0], [1], [0, 0, 1, 1], [], []>} : vector<16x32xf32>, vector<32x64xf32>, vector<16x64xf32> -> vector<16x64xf32>
    %c0_3 = arith.constant 0 : index
    %c0_4 = arith.constant 0 : index
    %3 = vector.load %arg4[%c0_3, %c0_4] : memref<1x64xf32, #tpu.memory_space<vmem>>, vector<1x64xf32>
    %4 = vector.broadcast %3 : vector<1x64xf32> to vector<16x64xf32>
    %5 = arith.addf %2, %4 : vector<16x64xf32>
    %c0_5 = arith.constant 0 : index
    %c0_6 = arith.constant 0 : index
    %6 = vector.load %arg5[%c0_5, %c0_6] : memref<16x64xf32, #tpu.memory_space<vmem>>, vector<16x64xf32>
    tpu.vector_store %arg5[%c0_5, %c0_6], %5 {strides = array<i32>} : memref<16x64xf32, #tpu.memory_space<vmem>>, vector<16x64xf32>,
    return
  }
  func.func @transform_0(%arg0: i32, %arg1: i32) -> (i32, i32) {
    %c0_i32 = arith.constant 0 : i32
    %c0_i32_0 = arith.constant 0 : i32
    return %arg0, %c0_i32 : i32, i32
  }
  func.func @transform_1(%arg0: i32, %arg1: i32) -> (i32, i32) {
    %c0_i32 = arith.constant 0 : i32
    %c0_i32_0 = arith.constant 0 : i32
    return %c0_i32, %arg1 : i32, i32
  }
  func.func @transform_2(%arg0: i32, %arg1: i32) -> (i32, i32) {
    %c0_i32 = arith.constant 0 : i32
    %c0_i32_0 = arith.constant 0 : i32
    return %c0_i32, %arg1 : i32, i32
  }
  func.func @transform_3(%arg0: i32, %arg1: i32) -> (i32, i32) {
    %c0_i32 = arith.constant 0 : i32
    return %arg0, %arg1 : i32, i32
  }
}

module attributes {stable_mosaic.version = 11 : i64} {
  func.func @_ffn_ln_kernel(%arg0: i32, %arg1: memref<16x32xf32, #tpu.memory_space<vmem>>, %arg2: memref<32x64xf32, #tpu.memory_space<vmem>>, %arg3: memref<1x64xf32, #tpu.memory_space<vmem>>, %arg4: memref<64x32xf32, #tpu.memory_space<vmem>>, %arg5: memref<1x32xf32, #tpu.memory_space<vmem>>, %arg6: memref<1x32xf32, #tpu.memory_space<vmem>>, %arg7: memref<1x32xf32, #tpu.memory_space<vmem>>, %arg8: memref<16x32xf32, #tpu.memory_space<vmem>>) attributes {dimension_semantics = [#tpu.dimension_semantics<parallel>], iteration_bounds = array<i64: 1>, scalar_prefetch = 0 : i64, scratch_operands = 0 : i64, tpu.core_type = #tpu.core_type<tc>, window_params = [{transform_indices = @transform_0, window_bounds = array<i64: 16, 32>}, {pipeline_mode = #tpu.pipeline_mode<synchronous>, transform_indices = @transform_1, window_bounds = array<i64: 32, 64>}, {pipeline_mode = #tpu.pipeline_mode<synchronous>, transform_indices = @transform_2, window_bounds = array<i64: 1, 64>}, {pipeline_mode = #tpu.pipeline_mode<synchronous>, transform_indices = @transform_3, window_bounds = array<i64: 64, 32>}, {pipeline_mode = #tpu.pipeline_mode<synchronous>, transform_indices = @transform_4, window_bounds = array<i64: 1, 32>}, {pipeline_mode = #tpu.pipeline_mode<synchronous>, transform_indices = @transform_5, window_bounds = array<i64: 1, 32>}, {pipeline_mode = #tpu.pipeline_mode<synchronous>, transform_indices = @transform_6, window_bounds = array<i64: 1, 32>}, {transform_indices = @transform_7, window_bounds = array<i64: 16, 32>}]} {
    %c0 = arith.constant 0 : index
    %c0_0 = arith.constant 0 : index
    %0 = vector.load %arg1[%c0, %c0_0] : memref<16x32xf32, #tpu.memory_space<vmem>>, vector<16x32xf32>
    %c0_1 = arith.constant 0 : index
    %c0_2 = arith.constant 0 : index
    %1 = vector.load %arg2[%c0_1, %c0_2] : memref<32x64xf32, #tpu.memory_space<vmem>>, vector<32x64xf32>
    %cst = arith.constant dense<0.000000e+00> : vector<16x64xf32>
    %2 = tpu.matmul %0, %1, %cst {dimension_numbers = #tpu.dot_dimension_numbers<[1], [0], [0], [1], [0, 0, 1, 1], [], []>} : vector<16x32xf32>, vector<32x64xf32>, vector<16x64xf32> -> vector<16x64xf32>
    %c0_3 = arith.constant 0 : index
    %c0_4 = arith.constant 0 : index
    %3 = vector.load %arg3[%c0_3, %c0_4] : memref<1x64xf32, #tpu.memory_space<vmem>>, vector<1x64xf32>
    %4 = vector.broadcast %3 : vector<1x64xf32> to vector<16x64xf32>
    %5 = arith.addf %2, %4 : vector<16x64xf32>
    %cst_5 = arith.constant 0.000000e+00 : f32
    %6 = vector.broadcast %cst_5 : f32 to vector<16x64xf32>
    %7 = arith.maximumf %5, %6 : vector<16x64xf32>
    %c0_6 = arith.constant 0 : index
    %c0_7 = arith.constant 0 : index
    %8 = vector.load %arg4[%c0_6, %c0_7] : memref<64x32xf32, #tpu.memory_space<vmem>>, vector<64x32xf32>
    %cst_8 = arith.constant dense<0.000000e+00> : vector<16x32xf32>
    %9 = tpu.matmul %7, %8, %cst_8 {dimension_numbers = #tpu.dot_dimension_numbers<[1], [0], [0], [1], [0, 0, 1, 1], [], []>} : vector<16x64xf32>, vector<64x32xf32>, vector<16x32xf32> -> vector<16x32xf32>
    %c0_9 = arith.constant 0 : index
    %c0_10 = arith.constant 0 : index
    %10 = vector.load %arg5[%c0_9, %c0_10] : memref<1x32xf32, #tpu.memory_space<vmem>>, vector<1x32xf32>
    %11 = vector.broadcast %10 : vector<1x32xf32> to vector<16x32xf32>
    %12 = arith.addf %9, %11 : vector<16x32xf32>
    %13 = arith.addf %0, %12 : vector<16x32xf32>
    %c0_11 = arith.constant 0 : index
    %c0_12 = arith.constant 0 : index
    %14 = vector.load %arg6[%c0_11, %c0_12] : memref<1x32xf32, #tpu.memory_space<vmem>>, vector<1x32xf32>
    %c0_13 = arith.constant 0 : index
    %c0_14 = arith.constant 0 : index
    %15 = vector.load %arg7[%c0_13, %c0_14] : memref<1x32xf32, #tpu.memory_space<vmem>>, vector<1x32xf32>
    %cst_15 = arith.constant dense<0.000000e+00> : vector<16xf32>
    %16 = vector.multi_reduction <add>, %13, %cst_15 [1] : vector<16x32xf32> to vector<16xf32>
    %17 = vector.shape_cast %16 : vector<16xf32> to vector<16x1xf32>
    %18 = arith.mulf %13, %13 : vector<16x32xf32>
    %cst_16 = arith.constant dense<0.000000e+00> : vector<16xf32>
    %19 = vector.multi_reduction <add>, %18, %cst_16 [1] : vector<16x32xf32> to vector<16xf32>
    %20 = vector.shape_cast %19 : vector<16xf32> to vector<16x1xf32>
    %cst_17 = arith.constant 3.125000e-02 : f32
    %21 = vector.broadcast %cst_17 : f32 to vector<16x1xf32>
    %22 = arith.mulf %17, %21 : vector<16x1xf32>
    %cst_18 = arith.constant 3.125000e-02 : f32
    %23 = vector.broadcast %cst_18 : f32 to vector<16x1xf32>
    %24 = arith.mulf %20, %23 : vector<16x1xf32>
    %25 = arith.mulf %22, %22 : vector<16x1xf32>
    %26 = arith.subf %24, %25 : vector<16x1xf32>
    %27 = vector.broadcast %22 : vector<16x1xf32> to vector<16x32xf32>
    %28 = arith.subf %13, %27 : vector<16x32xf32>
    %cst_19 = arith.constant 9.99999974E-6 : f32
    %29 = vector.broadcast %cst_19 : f32 to vector<16x1xf32>
    %30 = arith.addf %26, %29 : vector<16x1xf32>
    %31 = math.rsqrt %30 : vector<16x1xf32>
    %32 = vector.broadcast %31 : vector<16x1xf32> to vector<16x32xf32>
    %33 = arith.mulf %28, %32 : vector<16x32xf32>
    %34 = vector.broadcast %14 : vector<1x32xf32> to vector<16x32xf32>
    %35 = arith.mulf %33, %34 : vector<16x32xf32>
    %36 = vector.broadcast %15 : vector<1x32xf32> to vector<16x32xf32>
    %37 = arith.addf %35, %36 : vector<16x32xf32>
    %c0_20 = arith.constant 0 : index
    %c0_21 = arith.constant 0 : index
    %38 = vector.load %arg8[%c0_20, %c0_21] : memref<16x32xf32, #tpu.memory_space<vmem>>, vector<16x32xf32>
    tpu.vector_store %arg8[%c0_20, %c0_21], %37 {strides = array<i32>} : memref<16x32xf32, #tpu.memory_space<vmem>>, vector<16x32xf32>,
    return
  }
  func.func @transform_0(%arg0: i32) -> (i32, i32) {
    %c0_i32 = arith.constant 0 : i32
    %c0_i32_0 = arith.constant 0 : i32
    return %arg0, %c0_i32 : i32, i32
  }
  func.func @transform_1(%arg0: i32) -> (i32, i32) {
    %c0_i32 = arith.constant 0 : i32
    %c0_i32_0 = arith.constant 0 : i32
    %c0_i32_1 = arith.constant 0 : i32
    return %c0_i32, %c0_i32_0 : i32, i32
  }
  func.func @transform_2(%arg0: i32) -> (i32, i32) {
    %c0_i32 = arith.constant 0 : i32
    %c0_i32_0 = arith.constant 0 : i32
    %c0_i32_1 = arith.constant 0 : i32
    return %c0_i32, %c0_i32_0 : i32, i32
  }
  func.func @transform_3(%arg0: i32) -> (i32, i32) {
    %c0_i32 = arith.constant 0 : i32
    %c0_i32_0 = arith.constant 0 : i32
    %c0_i32_1 = arith.constant 0 : i32
    return %c0_i32, %c0_i32_0 : i32, i32
  }
  func.func @transform_4(%arg0: i32) -> (i32, i32) {
    %c0_i32 = arith.constant 0 : i32
    %c0_i32_0 = arith.constant 0 : i32
    %c0_i32_1 = arith.constant 0 : i32
    return %c0_i32, %c0_i32_0 : i32, i32
  }
  func.func @transform_5(%arg0: i32) -> (i32, i32) {
    %c0_i32 = arith.constant 0 : i32
    %c0_i32_0 = arith.constant 0 : i32
    %c0_i32_1 = arith.constant 0 : i32
    return %c0_i32, %c0_i32_0 : i32, i32
  }
  func.func @transform_6(%arg0: i32) -> (i32, i32) {
    %c0_i32 = arith.constant 0 : i32
    %c0_i32_0 = arith.constant 0 : i32
    %c0_i32_1 = arith.constant 0 : i32
    return %c0_i32, %c0_i32_0 : i32, i32
  }
  func.func @transform_7(%arg0: i32) -> (i32, i32) {
    %c0_i32 = arith.constant 0 : i32
    %c0_i32_0 = arith.constant 0 : i32
    return %arg0, %c0_i32 : i32, i32
  }
}

module attributes {stable_mosaic.version = 11 : i64} {
  func.func @_mha_ln_kernel(%arg0: i32, %arg1: i32, %arg2: memref<1x8x32xf32, #tpu.memory_space<vmem>>, %arg3: memref<32x32xf32, #tpu.memory_space<vmem>>, %arg4: memref<1x32xf32, #tpu.memory_space<vmem>>, %arg5: memref<32x64xf32, #tpu.memory_space<vmem>>, %arg6: memref<1x64xf32, #tpu.memory_space<vmem>>, %arg7: memref<32x32xf32, #tpu.memory_space<vmem>>, %arg8: memref<1x32xf32, #tpu.memory_space<vmem>>, %arg9: memref<1x32xf32, #tpu.memory_space<vmem>>, %arg10: memref<1x32xf32, #tpu.memory_space<vmem>>, %arg11: memref<1x8x32xf32, #tpu.memory_space<vmem>>, %arg12: memref<8x64xf32, #tpu.memory_space<vmem>>) attributes {dimension_semantics = [#tpu.dimension_semantics<parallel>, #tpu.dimension_semantics<arbitrary>], iteration_bounds = array<i64: 2, 1>, scalar_prefetch = 0 : i64, scratch_operands = 1 : i64, tpu.core_type = #tpu.core_type<tc>, window_params = [{transform_indices = @transform_0, window_bounds = array<i64: 1, 8, 32>}, {pipeline_mode = #tpu.pipeline_mode<synchronous>, transform_indices = @transform_1, window_bounds = array<i64: 32, 32>}, {pipeline_mode = #tpu.pipeline_mode<synchronous>, transform_indices = @transform_2, window_bounds = array<i64: 1, 32>}, {pipeline_mode = #tpu.pipeline_mode<synchronous>, transform_indices = @transform_3, window_bounds = array<i64: 32, 64>}, {pipeline_mode = #tpu.pipeline_mode<synchronous>, transform_indices = @transform_4, window_bounds = array<i64: 1, 64>}, {pipeline_mode = #tpu.pipeline_mode<synchronous>, transform_indices = @transform_5, window_bounds = array<i64: 32, 32>}, {pipeline_mode = #tpu.pipeline_mode<synchronous>, transform_indices = @transform_6, window_bounds = array<i64: 1, 32>}, {pipeline_mode = #tpu.pipeline_mode<synchronous>, transform_indices = @transform_7, window_bounds = array<i64: 1, 32>}, {pipeline_mode = #tpu.pipeline_mode<synchronous>, transform_indices = @transform_8, window_bounds = array<i64: 1, 32>}, {transform_indices = @transform_9, window_bounds = array<i64: 1, 8, 32>}]} {
    %c0_i32 = arith.constant 0 : i32
    %0 = arith.cmpi eq, %arg1, %c0_i32 : i32
    %1 = arith.extui %0 : i1 to i32
    %c0_i32_0 = arith.constant 0 : i32
    %2 = arith.cmpi ne, %1, %c0_i32_0 : i32
    scf.if %2 {
      %c0_50 = arith.constant 0 : index
      %c0_51 = arith.constant 0 : index
      %c0_52 = arith.constant 0 : index
      %120 = vector.load %arg2[%c0_50, %c0_51, %c0_52] : memref<1x8x32xf32, #tpu.memory_space<vmem>>, vector<1x8x32xf32>
      %121 = vector.shape_cast %120 : vector<1x8x32xf32> to vector<8x32xf32>
      %c0_53 = arith.constant 0 : index
      %c0_54 = arith.constant 0 : index
      %122 = vector.load %arg5[%c0_53, %c0_54] : memref<32x64xf32, #tpu.memory_space<vmem>>, vector<32x64xf32>
      %cst_55 = arith.constant dense<0.000000e+00> : vector<8x64xf32>
      %123 = tpu.matmul %121, %122, %cst_55 {dimension_numbers = #tpu.dot_dimension_numbers<[1], [0], [0], [1], [0, 0, 1, 1], [], []>} : vector<8x32xf32>, vector<32x64xf32>, vector<8x64xf32> -> vector<8x64xf32>
      %c0_56 = arith.constant 0 : index
      %c0_57 = arith.constant 0 : index
      %124 = vector.load %arg6[%c0_56, %c0_57] : memref<1x64xf32, #tpu.memory_space<vmem>>, vector<1x64xf32>
      %125 = vector.broadcast %124 : vector<1x64xf32> to vector<8x64xf32>
      %126 = arith.addf %123, %125 : vector<8x64xf32>
      %c0_58 = arith.constant 0 : index
      %c0_59 = arith.constant 0 : index
      %127 = vector.load %arg12[%c0_58, %c0_59] : memref<8x64xf32, #tpu.memory_space<vmem>>, vector<8x64xf32>
      tpu.vector_store %arg12[%c0_58, %c0_59], %126 {strides = array<i32>} : memref<8x64xf32, #tpu.memory_space<vmem>>, vector<8x64xf32>,
    } else {
    }
    %c0 = arith.constant 0 : index
    %c0_1 = arith.constant 0 : index
    %c0_2 = arith.constant 0 : index
    %3 = vector.load %arg2[%c0, %c0_1, %c0_2] : memref<1x8x32xf32, #tpu.memory_space<vmem>>, vector<1x8x32xf32>
    %4 = vector.shape_cast %3 : vector<1x8x32xf32> to vector<8x32xf32>
    %c0_3 = arith.constant 0 : index
    %c0_4 = arith.constant 0 : index
    %5 = vector.load %arg3[%c0_3, %c0_4] : memref<32x32xf32, #tpu.memory_space<vmem>>, vector<32x32xf32>
    %cst = arith.constant dense<0.000000e+00> : vector<8x32xf32>
    %6 = tpu.matmul %4, %5, %cst {dimension_numbers = #tpu.dot_dimension_numbers<[1], [0], [0], [1], [0, 0, 1, 1], [], []>} : vector<8x32xf32>, vector<32x32xf32>, vector<8x32xf32> -> vector<8x32xf32>
    %c0_5 = arith.constant 0 : index
    %c0_6 = arith.constant 0 : index
    %7 = vector.load %arg4[%c0_5, %c0_6] : memref<1x32xf32, #tpu.memory_space<vmem>>, vector<1x32xf32>
    %8 = vector.broadcast %7 : vector<1x32xf32> to vector<8x32xf32>
    %9 = arith.addf %6, %8 : vector<8x32xf32>
    %c0_7 = arith.constant 0 : index
    %c0_8 = arith.constant 0 : index
    %10 = vector.load %arg12[%c0_7, %c0_8] : memref<8x64xf32, #tpu.memory_space<vmem>>, vector<8x64xf32>
    %c0_9 = arith.constant 0 : index
    %c0_10 = arith.constant 0 : index
    %11 = vector.load %arg7[%c0_9, %c0_10] : memref<32x32xf32, #tpu.memory_space<vmem>>, vector<32x32xf32>
    %cst_11 = arith.constant 0.000000e+00 : f32
    %12 = vector.broadcast %cst_11 : f32 to vector<8x32xf32>
    %13 = vector.extract_strided_slice %9 {offsets = [0, 0], sizes = [8, 8], strides = [1, 1]} : vector<8x32xf32> to vector<8x8xf32>
    %14 = vector.extract_strided_slice %10 {offsets = [0, 0], sizes = [8, 8], strides = [1, 1]} : vector<8x64xf32> to vector<8x8xf32>
    %15 = vector.extract_strided_slice %10 {offsets = [0, 32], sizes = [8, 8], strides = [1, 1]} : vector<8x64xf32> to vector<8x8xf32>
    %cst_12 = arith.constant dense<0.000000e+00> : vector<8x8xf32>
    %16 = tpu.matmul %13, %14, %cst_12 {dimension_numbers = #tpu.dot_dimension_numbers<[1], [1], [0], [0], [0, 0, 1, 0], [], []>} : vector<8x8xf32>, vector<8x8xf32>, vector<8x8xf32> -> vector<8x8xf32>
    %cst_13 = arith.constant 0.353553385 : f32
    %17 = vector.broadcast %cst_13 : f32 to vector<8x8xf32>
    %18 = arith.mulf %16, %17 : vector<8x8xf32>
    %cst_14 = arith.constant dense<0xFF800000> : vector<8xf32>
    %19 = vector.multi_reduction <maximumf>, %18, %cst_14 [1] : vector<8x8xf32> to vector<8xf32>
    %20 = vector.shape_cast %19 : vector<8xf32> to vector<8x1xf32>
    %21 = vector.broadcast %20 : vector<8x1xf32> to vector<8x8xf32>
    %22 = arith.subf %18, %21 : vector<8x8xf32>
    %23 = math.exp %22 : vector<8x8xf32>
    %cst_15 = arith.constant dense<0.000000e+00> : vector<8xf32>
    %24 = vector.multi_reduction <add>, %23, %cst_15 [1] : vector<8x8xf32> to vector<8xf32>
    %25 = vector.shape_cast %24 : vector<8xf32> to vector<8x1xf32>
    %26 = vector.broadcast %25 : vector<8x1xf32> to vector<8x8xf32>
    %27 = arith.divf %23, %26 : vector<8x8xf32>
    %cst_16 = arith.constant dense<0.000000e+00> : vector<8x8xf32>
    %28 = tpu.matmul %27, %15, %cst_16 {dimension_numbers = #tpu.dot_dimension_numbers<[1], [0], [0], [1], [0, 0, 1, 1], [], []>} : vector<8x8xf32>, vector<8x8xf32>, vector<8x8xf32> -> vector<8x8xf32>
    %29 = vector.extract_strided_slice %11 {offsets = [0, 0], sizes = [8, 32], strides = [1, 1]} : vector<32x32xf32> to vector<8x32xf32>
    %cst_17 = arith.constant dense<0.000000e+00> : vector<8x32xf32>
    %30 = tpu.matmul %28, %29, %cst_17 {dimension_numbers = #tpu.dot_dimension_numbers<[1], [0], [0], [1], [0, 0, 1, 1], [], []>} : vector<8x8xf32>, vector<8x32xf32>, vector<8x32xf32> -> vector<8x32xf32>
    %31 = arith.addf %12, %30 : vector<8x32xf32>
    %32 = vector.extract_strided_slice %9 {offsets = [0, 8], sizes = [8, 8], strides = [1, 1]} : vector<8x32xf32> to vector<8x8xf32>
    %33 = vector.extract_strided_slice %10 {offsets = [0, 8], sizes = [8, 8], strides = [1, 1]} : vector<8x64xf32> to vector<8x8xf32>
    %34 = vector.extract_strided_slice %10 {offsets = [0, 40], sizes = [8, 8], strides = [1, 1]} : vector<8x64xf32> to vector<8x8xf32>
    %cst_18 = arith.constant dense<0.000000e+00> : vector<8x8xf32>
    %35 = tpu.matmul %32, %33, %cst_18 {dimension_numbers = #tpu.dot_dimension_numbers<[1], [1], [0], [0], [0, 0, 1, 0], [], []>} : vector<8x8xf32>, vector<8x8xf32>, vector<8x8xf32> -> vector<8x8xf32>
    %cst_19 = arith.constant 0.353553385 : f32
    %36 = vector.broadcast %cst_19 : f32 to vector<8x8xf32>
    %37 = arith.mulf %35, %36 : vector<8x8xf32>
    %cst_20 = arith.constant dense<0xFF800000> : vector<8xf32>
    %38 = vector.multi_reduction <maximumf>, %37, %cst_20 [1] : vector<8x8xf32> to vector<8xf32>
    %39 = vector.shape_cast %38 : vector<8xf32> to vector<8x1xf32>
    %40 = vector.broadcast %39 : vector<8x1xf32> to vector<8x8xf32>
    %41 = arith.subf %37, %40 : vector<8x8xf32>
    %42 = math.exp %41 : vector<8x8xf32>
    %cst_21 = arith.constant dense<0.000000e+00> : vector<8xf32>
    %43 = vector.multi_reduction <add>, %42, %cst_21 [1] : vector<8x8xf32> to vector<8xf32>
    %44 = vector.shape_cast %43 : vector<8xf32> to vector<8x1xf32>
    %45 = vector.broadcast %44 : vector<8x1xf32> to vector<8x8xf32>
    %46 = arith.divf %42, %45 : vector<8x8xf32>
    %cst_22 = arith.constant dense<0.000000e+00> : vector<8x8xf32>
    %47 = tpu.matmul %46, %34, %cst_22 {dimension_numbers = #tpu.dot_dimension_numbers<[1], [0], [0], [1], [0, 0, 1, 1], [], []>} : vector<8x8xf32>, vector<8x8xf32>, vector<8x8xf32> -> vector<8x8xf32>
    %48 = vector.extract_strided_slice %11 {offsets = [8, 0], sizes = [8, 32], strides = [1, 1]} : vector<32x32xf32> to vector<8x32xf32>
    %cst_23 = arith.constant dense<0.000000e+00> : vector<8x32xf32>
    %49 = tpu.matmul %47, %48, %cst_23 {dimension_numbers = #tpu.dot_dimension_numbers<[1], [0], [0], [1], [0, 0, 1, 1], [], []>} : vector<8x8xf32>, vector<8x32xf32>, vector<8x32xf32> -> vector<8x32xf32>
    %50 = arith.addf %31, %49 : vector<8x32xf32>
    %51 = vector.extract_strided_slice %9 {offsets = [0, 16], sizes = [8, 8], strides = [1, 1]} : vector<8x32xf32> to vector<8x8xf32>
    %52 = vector.extract_strided_slice %10 {offsets = [0, 16], sizes = [8, 8], strides = [1, 1]} : vector<8x64xf32> to vector<8x8xf32>
    %53 = vector.extract_strided_slice %10 {offsets = [0, 48], sizes = [8, 8], strides = [1, 1]} : vector<8x64xf32> to vector<8x8xf32>
    %cst_24 = arith.constant dense<0.000000e+00> : vector<8x8xf32>
    %54 = tpu.matmul %51, %52, %cst_24 {dimension_numbers = #tpu.dot_dimension_numbers<[1], [1], [0], [0], [0, 0, 1, 0], [], []>} : vector<8x8xf32>, vector<8x8xf32>, vector<8x8xf32> -> vector<8x8xf32>
    %cst_25 = arith.constant 0.353553385 : f32
    %55 = vector.broadcast %cst_25 : f32 to vector<8x8xf32>
    %56 = arith.mulf %54, %55 : vector<8x8xf32>
    %cst_26 = arith.constant dense<0xFF800000> : vector<8xf32>
    %57 = vector.multi_reduction <maximumf>, %56, %cst_26 [1] : vector<8x8xf32> to vector<8xf32>
    %58 = vector.shape_cast %57 : vector<8xf32> to vector<8x1xf32>
    %59 = vector.broadcast %58 : vector<8x1xf32> to vector<8x8xf32>
    %60 = arith.subf %56, %59 : vector<8x8xf32>
    %61 = math.exp %60 : vector<8x8xf32>
    %cst_27 = arith.constant dense<0.000000e+00> : vector<8xf32>
    %62 = vector.multi_reduction <add>, %61, %cst_27 [1] : vector<8x8xf32> to vector<8xf32>
    %63 = vector.shape_cast %62 : vector<8xf32> to vector<8x1xf32>
    %64 = vector.broadcast %63 : vector<8x1xf32> to vector<8x8xf32>
    %65 = arith.divf %61, %64 : vector<8x8xf32>
    %cst_28 = arith.constant dense<0.000000e+00> : vector<8x8xf32>
    %66 = tpu.matmul %65, %53, %cst_28 {dimension_numbers = #tpu.dot_dimension_numbers<[1], [0], [0], [1], [0, 0, 1, 1], [], []>} : vector<8x8xf32>, vector<8x8xf32>, vector<8x8xf32> -> vector<8x8xf32>
    %67 = vector.extract_strided_slice %11 {offsets = [16, 0], sizes = [8, 32], strides = [1, 1]} : vector<32x32xf32> to vector<8x32xf32>
    %cst_29 = arith.constant dense<0.000000e+00> : vector<8x32xf32>
    %68 = tpu.matmul %66, %67, %cst_29 {dimension_numbers = #tpu.dot_dimension_numbers<[1], [0], [0], [1], [0, 0, 1, 1], [], []>} : vector<8x8xf32>, vector<8x32xf32>, vector<8x32xf32> -> vector<8x32xf32>
    %69 = arith.addf %50, %68 : vector<8x32xf32>
    %70 = vector.extract_strided_slice %9 {offsets = [0, 24], sizes = [8, 8], strides = [1, 1]} : vector<8x32xf32> to vector<8x8xf32>
    %71 = vector.extract_strided_slice %10 {offsets = [0, 24], sizes = [8, 8], strides = [1, 1]} : vector<8x64xf32> to vector<8x8xf32>
    %72 = vector.extract_strided_slice %10 {offsets = [0, 56], sizes = [8, 8], strides = [1, 1]} : vector<8x64xf32> to vector<8x8xf32>
    %cst_30 = arith.constant dense<0.000000e+00> : vector<8x8xf32>
    %73 = tpu.matmul %70, %71, %cst_30 {dimension_numbers = #tpu.dot_dimension_numbers<[1], [1], [0], [0], [0, 0, 1, 0], [], []>} : vector<8x8xf32>, vector<8x8xf32>, vector<8x8xf32> -> vector<8x8xf32>
    %cst_31 = arith.constant 0.353553385 : f32
    %74 = vector.broadcast %cst_31 : f32 to vector<8x8xf32>
    %75 = arith.mulf %73, %74 : vector<8x8xf32>
    %cst_32 = arith.constant dense<0xFF800000> : vector<8xf32>
    %76 = vector.multi_reduction <maximumf>, %75, %cst_32 [1] : vector<8x8xf32> to vector<8xf32>
    %77 = vector.shape_cast %76 : vector<8xf32> to vector<8x1xf32>
    %78 = vector.broadcast %77 : vector<8x1xf32> to vector<8x8xf32>
    %79 = arith.subf %75, %78 : vector<8x8xf32>
    %80 = math.exp %79 : vector<8x8xf32>
    %cst_33 = arith.constant dense<0.000000e+00> : vector<8xf32>
    %81 = vector.multi_reduction <add>, %80, %cst_33 [1] : vector<8x8xf32> to vector<8xf32>
    %82 = vector.shape_cast %81 : vector<8xf32> to vector<8x1xf32>
    %83 = vector.broadcast %82 : vector<8x1xf32> to vector<8x8xf32>
    %84 = arith.divf %80, %83 : vector<8x8xf32>
    %cst_34 = arith.constant dense<0.000000e+00> : vector<8x8xf32>
    %85 = tpu.matmul %84, %72, %cst_34 {dimension_numbers = #tpu.dot_dimension_numbers<[1], [0], [0], [1], [0, 0, 1, 1], [], []>} : vector<8x8xf32>, vector<8x8xf32>, vector<8x8xf32> -> vector<8x8xf32>
    %86 = vector.extract_strided_slice %11 {offsets = [24, 0], sizes = [8, 32], strides = [1, 1]} : vector<32x32xf32> to vector<8x32xf32>
    %cst_35 = arith.constant dense<0.000000e+00> : vector<8x32xf32>
    %87 = tpu.matmul %85, %86, %cst_35 {dimension_numbers = #tpu.dot_dimension_numbers<[1], [0], [0], [1], [0, 0, 1, 1], [], []>} : vector<8x8xf32>, vector<8x32xf32>, vector<8x32xf32> -> vector<8x32xf32>
    %88 = arith.addf %69, %87 : vector<8x32xf32>
    %89 = arith.addf %4, %88 : vector<8x32xf32>
    %c0_36 = arith.constant 0 : index
    %c0_37 = arith.constant 0 : index
    %90 = vector.load %arg8[%c0_36, %c0_37] : memref<1x32xf32, #tpu.memory_space<vmem>>, vector<1x32xf32>
    %91 = vector.broadcast %90 : vector<1x32xf32> to vector<8x32xf32>
    %92 = arith.addf %89, %91 : vector<8x32xf32>
    %c0_38 = arith.constant 0 : index
    %c0_39 = arith.constant 0 : index
    %93 = vector.load %arg9[%c0_38, %c0_39] : memref<1x32xf32, #tpu.memory_space<vmem>>, vector<1x32xf32>
    %c0_40 = arith.constant 0 : index
    %c0_41 = arith.constant 0 : index
    %94 = vector.load %arg10[%c0_40, %c0_41] : memref<1x32xf32, #tpu.memory_space<vmem>>, vector<1x32xf32>
    %cst_42 = arith.constant dense<0.000000e+00> : vector<8xf32>
    %95 = vector.multi_reduction <add>, %92, %cst_42 [1] : vector<8x32xf32> to vector<8xf32>
    %96 = vector.shape_cast %95 : vector<8xf32> to vector<8x1xf32>
    %97 = arith.mulf %92, %92 : vector<8x32xf32>
    %cst_43 = arith.constant dense<0.000000e+00> : vector<8xf32>
    %98 = vector.multi_reduction <add>, %97, %cst_43 [1] : vector<8x32xf32> to vector<8xf32>
    %99 = vector.shape_cast %98 : vector<8xf32> to vector<8x1xf32>
    %cst_44 = arith.constant 3.125000e-02 : f32
    %100 = vector.broadcast %cst_44 : f32 to vector<8x1xf32>
    %101 = arith.mulf %96, %100 : vector<8x1xf32>
    %cst_45 = arith.constant 3.125000e-02 : f32
    %102 = vector.broadcast %cst_45 : f32 to vector<8x1xf32>
    %103 = arith.mulf %99, %102 : vector<8x1xf32>
    %104 = arith.mulf %101, %101 : vector<8x1xf32>
    %105 = arith.subf %103, %104 : vector<8x1xf32>
    %106 = vector.broadcast %101 : vector<8x1xf32> to vector<8x32xf32>
    %107 = arith.subf %92, %106 : vector<8x32xf32>
    %cst_46 = arith.constant 9.99999974E-6 : f32
    %108 = vector.broadcast %cst_46 : f32 to vector<8x1xf32>
    %109 = arith.addf %105, %108 : vector<8x1xf32>
    %110 = math.rsqrt %109 : vector<8x1xf32>
    %111 = vector.broadcast %110 : vector<8x1xf32> to vector<8x32xf32>
    %112 = arith.mulf %107, %111 : vector<8x32xf32>
    %113 = vector.broadcast %93 : vector<1x32xf32> to vector<8x32xf32>
    %114 = arith.mulf %112, %113 : vector<8x32xf32>
    %115 = vector.broadcast %94 : vector<1x32xf32> to vector<8x32xf32>
    %116 = arith.addf %114, %115 : vector<8x32xf32>
    %c0_47 = arith.constant 0 : index
    %c0_48 = arith.constant 0 : index
    %c0_49 = arith.constant 0 : index
    %117 = vector.load %arg11[%c0_47, %c0_48, %c0_49] : memref<1x8x32xf32, #tpu.memory_space<vmem>>, vector<1x8x32xf32>
    %118 = vector.shape_cast %117 : vector<1x8x32xf32> to vector<8x32xf32>
    %119 = vector.shape_cast %116 : vector<8x32xf32> to vector<1x8x32xf32>
    tpu.vector_store %arg11[%c0_47, %c0_48, %c0_49], %119 {strides = array<i32>} : memref<1x8x32xf32, #tpu.memory_space<vmem>>, vector<1x8x32xf32>,
    return
  }
  func.func @transform_0(%arg0: i32, %arg1: i32) -> (i32, i32, i32) {
    %c0_i32 = arith.constant 0 : i32
    %c0_i32_0 = arith.constant 0 : i32
    return %arg0, %arg1, %c0_i32 : i32, i32, i32
  }
  func.func @transform_1(%arg0: i32, %arg1: i32) -> (i32, i32) {
    %c0_i32 = arith.constant 0 : i32
    %c0_i32_0 = arith.constant 0 : i32
    %c0_i32_1 = arith.constant 0 : i32
    return %c0_i32, %c0_i32_0 : i32, i32
  }
  func.func @transform_2(%arg0: i32, %arg1: i32) -> (i32, i32) {
    %c0_i32 = arith.constant 0 : i32
    %c0_i32_0 = arith.constant 0 : i32
    %c0_i32_1 = arith.constant 0 : i32
    return %c0_i32, %c0_i32_0 : i32, i32
  }
  func.func @transform_3(%arg0: i32, %arg1: i32) -> (i32, i32) {
    %c0_i32 = arith.constant 0 : i32
    %c0_i32_0 = arith.constant 0 : i32
    %c0_i32_1 = arith.constant 0 : i32
    return %c0_i32, %c0_i32_0 : i32, i32
  }
  func.func @transform_4(%arg0: i32, %arg1: i32) -> (i32, i32) {
    %c0_i32 = arith.constant 0 : i32
    %c0_i32_0 = arith.constant 0 : i32
    %c0_i32_1 = arith.constant 0 : i32
    return %c0_i32, %c0_i32_0 : i32, i32
  }
  func.func @transform_5(%arg0: i32, %arg1: i32) -> (i32, i32) {
    %c0_i32 = arith.constant 0 : i32
    %c0_i32_0 = arith.constant 0 : i32
    %c0_i32_1 = arith.constant 0 : i32
    return %c0_i32, %c0_i32_0 : i32, i32
  }
  func.func @transform_6(%arg0: i32, %arg1: i32) -> (i32, i32) {
    %c0_i32 = arith.constant 0 : i32
    %c0_i32_0 = arith.constant 0 : i32
    %c0_i32_1 = arith.constant 0 : i32
    return %c0_i32, %c0_i32_0 : i32, i32
  }
  func.func @transform_7(%arg0: i32, %arg1: i32) -> (i32, i32) {
    %c0_i32 = arith.constant 0 : i32
    %c0_i32_0 = arith.constant 0 : i32
    %c0_i32_1 = arith.constant 0 : i32
    return %c0_i32, %c0_i32_0 : i32, i32
  }
  func.func @transform_8(%arg0: i32, %arg1: i32) -> (i32, i32) {
    %c0_i32 = arith.constant 0 : i32
    %c0_i32_0 = arith.constant 0 : i32
    %c0_i32_1 = arith.constant 0 : i32
    return %c0_i32, %c0_i32_0 : i32, i32
  }
  func.func @transform_9(%arg0: i32, %arg1: i32) -> (i32, i32, i32) {
    %c0_i32 = arith.constant 0 : i32
    %c0_i32_0 = arith.constant 0 : i32
    return %arg0, %arg1, %c0_i32 : i32, i32, i32
  }
}

module attributes {stable_mosaic.version = 11 : i64} {
  func.func @_mha_ln_kernel(%arg0: i32, %arg1: i32, %arg2: memref<1x8x32xf32, #tpu.memory_space<vmem>>, %arg3: memref<1x8x32xf32, #tpu.memory_space<vmem>>, %arg4: memref<32x32xf32, #tpu.memory_space<vmem>>, %arg5: memref<1x32xf32, #tpu.memory_space<vmem>>, %arg6: memref<32x64xf32, #tpu.memory_space<vmem>>, %arg7: memref<1x64xf32, #tpu.memory_space<vmem>>, %arg8: memref<32x32xf32, #tpu.memory_space<vmem>>, %arg9: memref<1x32xf32, #tpu.memory_space<vmem>>, %arg10: memref<1x32xf32, #tpu.memory_space<vmem>>, %arg11: memref<1x32xf32, #tpu.memory_space<vmem>>, %arg12: memref<1x8x32xf32, #tpu.memory_space<vmem>>, %arg13: memref<8x64xf32, #tpu.memory_space<vmem>>) attributes {dimension_semantics = [#tpu.dimension_semantics<parallel>, #tpu.dimension_semantics<arbitrary>], iteration_bounds = array<i64: 2, 1>, scalar_prefetch = 0 : i64, scratch_operands = 1 : i64, tpu.core_type = #tpu.core_type<tc>, window_params = [{transform_indices = @transform_0, window_bounds = array<i64: 1, 8, 32>}, {transform_indices = @transform_1, window_bounds = array<i64: 1, 8, 32>}, {pipeline_mode = #tpu.pipeline_mode<synchronous>, transform_indices = @transform_2, window_bounds = array<i64: 32, 32>}, {pipeline_mode = #tpu.pipeline_mode<synchronous>, transform_indices = @transform_3, window_bounds = array<i64: 1, 32>}, {pipeline_mode = #tpu.pipeline_mode<synchronous>, transform_indices = @transform_4, window_bounds = array<i64: 32, 64>}, {pipeline_mode = #tpu.pipeline_mode<synchronous>, transform_indices = @transform_5, window_bounds = array<i64: 1, 64>}, {pipeline_mode = #tpu.pipeline_mode<synchronous>, transform_indices = @transform_6, window_bounds = array<i64: 32, 32>}, {pipeline_mode = #tpu.pipeline_mode<synchronous>, transform_indices = @transform_7, window_bounds = array<i64: 1, 32>}, {pipeline_mode = #tpu.pipeline_mode<synchronous>, transform_indices = @transform_8, window_bounds = array<i64: 1, 32>}, {pipeline_mode = #tpu.pipeline_mode<synchronous>, transform_indices = @transform_9, window_bounds = array<i64: 1, 32>}, {transform_indices = @transform_10, window_bounds = array<i64: 1, 8, 32>}]} {
    %c0_i32 = arith.constant 0 : i32
    %0 = arith.cmpi eq, %arg1, %c0_i32 : i32
    %1 = arith.extui %0 : i1 to i32
    %c0_i32_0 = arith.constant 0 : i32
    %2 = arith.cmpi ne, %1, %c0_i32_0 : i32
    scf.if %2 {
      %c0_50 = arith.constant 0 : index
      %c0_51 = arith.constant 0 : index
      %c0_52 = arith.constant 0 : index
      %120 = vector.load %arg3[%c0_50, %c0_51, %c0_52] : memref<1x8x32xf32, #tpu.memory_space<vmem>>, vector<1x8x32xf32>
      %121 = vector.shape_cast %120 : vector<1x8x32xf32> to vector<8x32xf32>
      %c0_53 = arith.constant 0 : index
      %c0_54 = arith.constant 0 : index
      %122 = vector.load %arg6[%c0_53, %c0_54] : memref<32x64xf32, #tpu.memory_space<vmem>>, vector<32x64xf32>
      %cst_55 = arith.constant dense<0.000000e+00> : vector<8x64xf32>
      %123 = tpu.matmul %121, %122, %cst_55 {dimension_numbers = #tpu.dot_dimension_numbers<[1], [0], [0], [1], [0, 0, 1, 1], [], []>} : vector<8x32xf32>, vector<32x64xf32>, vector<8x64xf32> -> vector<8x64xf32>
      %c0_56 = arith.constant 0 : index
      %c0_57 = arith.constant 0 : index
      %124 = vector.load %arg7[%c0_56, %c0_57] : memref<1x64xf32, #tpu.memory_space<vmem>>, vector<1x64xf32>
      %125 = vector.broadcast %124 : vector<1x64xf32> to vector<8x64xf32>
      %126 = arith.addf %123, %125 : vector<8x64xf32>
      %c0_58 = arith.constant 0 : index
      %c0_59 = arith.constant 0 : index
      %127 = vector.load %arg13[%c0_58, %c0_59] : memref<8x64xf32, #tpu.memory_space<vmem>>, vector<8x64xf32>
      tpu.vector_store %arg13[%c0_58, %c0_59], %126 {strides = array<i32>} : memref<8x64xf32, #tpu.memory_space<vmem>>, vector<8x64xf32>,
    } else {
    }
    %c0 = arith.constant 0 : index
    %c0_1 = arith.constant 0 : index
    %c0_2 = arith.constant 0 : index
    %3 = vector.load %arg2[%c0, %c0_1, %c0_2] : memref<1x8x32xf32, #tpu.memory_space<vmem>>, vector<1x8x32xf32>
    %4 = vector.shape_cast %3 : vector<1x8x32xf32> to vector<8x32xf32>
    %c0_3 = arith.constant 0 : index
    %c0_4 = arith.constant 0 : index
    %5 = vector.load %arg4[%c0_3, %c0_4] : memref<32x32xf32, #tpu.memory_space<vmem>>, vector<32x32xf32>
    %cst = arith.constant dense<0.000000e+00> : vector<8x32xf32>
    %6 = tpu.matmul %4, %5, %cst {dimension_numbers = #tpu.dot_dimension_numbers<[1], [0], [0], [1], [0, 0, 1, 1], [], []>} : vector<8x32xf32>, vector<32x32xf32>, vector<8x32xf32> -> vector<8x32xf32>
    %c0_5 = arith.constant 0 : index
    %c0_6 = arith.constant 0 : index
    %7 = vector.load %arg5[%c0_5, %c0_6] : memref<1x32xf32, #tpu.memory_space<vmem>>, vector<1x32xf32>
    %8 = vector.broadcast %7 : vector<1x32xf32> to vector<8x32xf32>
    %9 = arith.addf %6, %8 : vector<8x32xf32>
    %c0_7 = arith.constant 0 : index
    %c0_8 = arith.constant 0 : index
    %10 = vector.load %arg13[%c0_7, %c0_8] : memref<8x64xf32, #tpu.memory_space<vmem>>, vector<8x64xf32>
    %c0_9 = arith.constant 0 : index
    %c0_10 = arith.constant 0 : index
    %11 = vector.load %arg8[%c0_9, %c0_10] : memref<32x32xf32, #tpu.memory_space<vmem>>, vector<32x32xf32>
    %cst_11 = arith.constant 0.000000e+00 : f32
    %12 = vector.broadcast %cst_11 : f32 to vector<8x32xf32>
    %13 = vector.extract_strided_slice %9 {offsets = [0, 0], sizes = [8, 8], strides = [1, 1]} : vector<8x32xf32> to vector<8x8xf32>
    %14 = vector.extract_strided_slice %10 {offsets = [0, 0], sizes = [8, 8], strides = [1, 1]} : vector<8x64xf32> to vector<8x8xf32>
    %15 = vector.extract_strided_slice %10 {offsets = [0, 32], sizes = [8, 8], strides = [1, 1]} : vector<8x64xf32> to vector<8x8xf32>
    %cst_12 = arith.constant dense<0.000000e+00> : vector<8x8xf32>
    %16 = tpu.matmul %13, %14, %cst_12 {dimension_numbers = #tpu.dot_dimension_numbers<[1], [1], [0], [0], [0, 0, 1, 0], [], []>} : vector<8x8xf32>, vector<8x8xf32>, vector<8x8xf32> -> vector<8x8xf32>
    %cst_13 = arith.constant 0.353553385 : f32
    %17 = vector.broadcast %cst_13 : f32 to vector<8x8xf32>
    %18 = arith.mulf %16, %17 : vector<8x8xf32>
    %cst_14 = arith.constant dense<0xFF800000> : vector<8xf32>
    %19 = vector.multi_reduction <maximumf>, %18, %cst_14 [1] : vector<8x8xf32> to vector<8xf32>
    %20 = vector.shape_cast %19 : vector<8xf32> to vector<8x1xf32>
    %21 = vector.broadcast %20 : vector<8x1xf32> to vector<8x8xf32>
    %22 = arith.subf %18, %21 : vector<8x8xf32>
    %23 = math.exp %22 : vector<8x8xf32>
    %cst_15 = arith.constant dense<0.000000e+00> : vector<8xf32>
    %24 = vector.multi_reduction <add>, %23, %cst_15 [1] : vector<8x8xf32> to vector<8xf32>
    %25 = vector.shape_cast %24 : vector<8xf32> to vector<8x1xf32>
    %26 = vector.broadcast %25 : vector<8x1xf32> to vector<8x8xf32>
    %27 = arith.divf %23, %26 : vector<8x8xf32>
    %cst_16 = arith.constant dense<0.000000e+00> : vector<8x8xf32>
    %28 = tpu.matmul %27, %15, %cst_16 {dimension_numbers = #tpu.dot_dimension_numbers<[1], [0], [0], [1], [0, 0, 1, 1], [], []>} : vector<8x8xf32>, vector<8x8xf32>, vector<8x8xf32> -> vector<8x8xf32>
    %29 = vector.extract_strided_slice %11 {offsets = [0, 0], sizes = [8, 32], strides = [1, 1]} : vector<32x32xf32> to vector<8x32xf32>
    %cst_17 = arith.constant dense<0.000000e+00> : vector<8x32xf32>
    %30 = tpu.matmul %28, %29, %cst_17 {dimension_numbers = #tpu.dot_dimension_numbers<[1], [0], [0], [1], [0, 0, 1, 1], [], []>} : vector<8x8xf32>, vector<8x32xf32>, vector<8x32xf32> -> vector<8x32xf32>
    %31 = arith.addf %12, %30 : vector<8x32xf32>
    %32 = vector.extract_strided_slice %9 {offsets = [0, 8], sizes = [8, 8], strides = [1, 1]} : vector<8x32xf32> to vector<8x8xf32>
    %33 = vector.extract_strided_slice %10 {offsets = [0, 8], sizes = [8, 8], strides = [1, 1]} : vector<8x64xf32> to vector<8x8xf32>
    %34 = vector.extract_strided_slice %10 {offsets = [0, 40], sizes = [8, 8], strides = [1, 1]} : vector<8x64xf32> to vector<8x8xf32>
    %cst_18 = arith.constant dense<0.000000e+00> : vector<8x8xf32>
    %35 = tpu.matmul %32, %33, %cst_18 {dimension_numbers = #tpu.dot_dimension_numbers<[1], [1], [0], [0], [0, 0, 1, 0], [], []>} : vector<8x8xf32>, vector<8x8xf32>, vector<8x8xf32> -> vector<8x8xf32>
    %cst_19 = arith.constant 0.353553385 : f32
    %36 = vector.broadcast %cst_19 : f32 to vector<8x8xf32>
    %37 = arith.mulf %35, %36 : vector<8x8xf32>
    %cst_20 = arith.constant dense<0xFF800000> : vector<8xf32>
    %38 = vector.multi_reduction <maximumf>, %37, %cst_20 [1] : vector<8x8xf32> to vector<8xf32>
    %39 = vector.shape_cast %38 : vector<8xf32> to vector<8x1xf32>
    %40 = vector.broadcast %39 : vector<8x1xf32> to vector<8x8xf32>
    %41 = arith.subf %37, %40 : vector<8x8xf32>
    %42 = math.exp %41 : vector<8x8xf32>
    %cst_21 = arith.constant dense<0.000000e+00> : vector<8xf32>
    %43 = vector.multi_reduction <add>, %42, %cst_21 [1] : vector<8x8xf32> to vector<8xf32>
    %44 = vector.shape_cast %43 : vector<8xf32> to vector<8x1xf32>
    %45 = vector.broadcast %44 : vector<8x1xf32> to vector<8x8xf32>
    %46 = arith.divf %42, %45 : vector<8x8xf32>
    %cst_22 = arith.constant dense<0.000000e+00> : vector<8x8xf32>
    %47 = tpu.matmul %46, %34, %cst_22 {dimension_numbers = #tpu.dot_dimension_numbers<[1], [0], [0], [1], [0, 0, 1, 1], [], []>} : vector<8x8xf32>, vector<8x8xf32>, vector<8x8xf32> -> vector<8x8xf32>
    %48 = vector.extract_strided_slice %11 {offsets = [8, 0], sizes = [8, 32], strides = [1, 1]} : vector<32x32xf32> to vector<8x32xf32>
    %cst_23 = arith.constant dense<0.000000e+00> : vector<8x32xf32>
    %49 = tpu.matmul %47, %48, %cst_23 {dimension_numbers = #tpu.dot_dimension_numbers<[1], [0], [0], [1], [0, 0, 1, 1], [], []>} : vector<8x8xf32>, vector<8x32xf32>, vector<8x32xf32> -> vector<8x32xf32>
    %50 = arith.addf %31, %49 : vector<8x32xf32>
    %51 = vector.extract_strided_slice %9 {offsets = [0, 16], sizes = [8, 8], strides = [1, 1]} : vector<8x32xf32> to vector<8x8xf32>
    %52 = vector.extract_strided_slice %10 {offsets = [0, 16], sizes = [8, 8], strides = [1, 1]} : vector<8x64xf32> to vector<8x8xf32>
    %53 = vector.extract_strided_slice %10 {offsets = [0, 48], sizes = [8, 8], strides = [1, 1]} : vector<8x64xf32> to vector<8x8xf32>
    %cst_24 = arith.constant dense<0.000000e+00> : vector<8x8xf32>
    %54 = tpu.matmul %51, %52, %cst_24 {dimension_numbers = #tpu.dot_dimension_numbers<[1], [1], [0], [0], [0, 0, 1, 0], [], []>} : vector<8x8xf32>, vector<8x8xf32>, vector<8x8xf32> -> vector<8x8xf32>
    %cst_25 = arith.constant 0.353553385 : f32
    %55 = vector.broadcast %cst_25 : f32 to vector<8x8xf32>
    %56 = arith.mulf %54, %55 : vector<8x8xf32>
    %cst_26 = arith.constant dense<0xFF800000> : vector<8xf32>
    %57 = vector.multi_reduction <maximumf>, %56, %cst_26 [1] : vector<8x8xf32> to vector<8xf32>
    %58 = vector.shape_cast %57 : vector<8xf32> to vector<8x1xf32>
    %59 = vector.broadcast %58 : vector<8x1xf32> to vector<8x8xf32>
    %60 = arith.subf %56, %59 : vector<8x8xf32>
    %61 = math.exp %60 : vector<8x8xf32>
    %cst_27 = arith.constant dense<0.000000e+00> : vector<8xf32>
    %62 = vector.multi_reduction <add>, %61, %cst_27 [1] : vector<8x8xf32> to vector<8xf32>
    %63 = vector.shape_cast %62 : vector<8xf32> to vector<8x1xf32>
    %64 = vector.broadcast %63 : vector<8x1xf32> to vector<8x8xf32>
    %65 = arith.divf %61, %64 : vector<8x8xf32>
    %cst_28 = arith.constant dense<0.000000e+00> : vector<8x8xf32>
    %66 = tpu.matmul %65, %53, %cst_28 {dimension_numbers = #tpu.dot_dimension_numbers<[1], [0], [0], [1], [0, 0, 1, 1], [], []>} : vector<8x8xf32>, vector<8x8xf32>, vector<8x8xf32> -> vector<8x8xf32>
    %67 = vector.extract_strided_slice %11 {offsets = [16, 0], sizes = [8, 32], strides = [1, 1]} : vector<32x32xf32> to vector<8x32xf32>
    %cst_29 = arith.constant dense<0.000000e+00> : vector<8x32xf32>
    %68 = tpu.matmul %66, %67, %cst_29 {dimension_numbers = #tpu.dot_dimension_numbers<[1], [0], [0], [1], [0, 0, 1, 1], [], []>} : vector<8x8xf32>, vector<8x32xf32>, vector<8x32xf32> -> vector<8x32xf32>
    %69 = arith.addf %50, %68 : vector<8x32xf32>
    %70 = vector.extract_strided_slice %9 {offsets = [0, 24], sizes = [8, 8], strides = [1, 1]} : vector<8x32xf32> to vector<8x8xf32>
    %71 = vector.extract_strided_slice %10 {offsets = [0, 24], sizes = [8, 8], strides = [1, 1]} : vector<8x64xf32> to vector<8x8xf32>
    %72 = vector.extract_strided_slice %10 {offsets = [0, 56], sizes = [8, 8], strides = [1, 1]} : vector<8x64xf32> to vector<8x8xf32>
    %cst_30 = arith.constant dense<0.000000e+00> : vector<8x8xf32>
    %73 = tpu.matmul %70, %71, %cst_30 {dimension_numbers = #tpu.dot_dimension_numbers<[1], [1], [0], [0], [0, 0, 1, 0], [], []>} : vector<8x8xf32>, vector<8x8xf32>, vector<8x8xf32> -> vector<8x8xf32>
    %cst_31 = arith.constant 0.353553385 : f32
    %74 = vector.broadcast %cst_31 : f32 to vector<8x8xf32>
    %75 = arith.mulf %73, %74 : vector<8x8xf32>
    %cst_32 = arith.constant dense<0xFF800000> : vector<8xf32>
    %76 = vector.multi_reduction <maximumf>, %75, %cst_32 [1] : vector<8x8xf32> to vector<8xf32>
    %77 = vector.shape_cast %76 : vector<8xf32> to vector<8x1xf32>
    %78 = vector.broadcast %77 : vector<8x1xf32> to vector<8x8xf32>
    %79 = arith.subf %75, %78 : vector<8x8xf32>
    %80 = math.exp %79 : vector<8x8xf32>
    %cst_33 = arith.constant dense<0.000000e+00> : vector<8xf32>
    %81 = vector.multi_reduction <add>, %80, %cst_33 [1] : vector<8x8xf32> to vector<8xf32>
    %82 = vector.shape_cast %81 : vector<8xf32> to vector<8x1xf32>
    %83 = vector.broadcast %82 : vector<8x1xf32> to vector<8x8xf32>
    %84 = arith.divf %80, %83 : vector<8x8xf32>
    %cst_34 = arith.constant dense<0.000000e+00> : vector<8x8xf32>
    %85 = tpu.matmul %84, %72, %cst_34 {dimension_numbers = #tpu.dot_dimension_numbers<[1], [0], [0], [1], [0, 0, 1, 1], [], []>} : vector<8x8xf32>, vector<8x8xf32>, vector<8x8xf32> -> vector<8x8xf32>
    %86 = vector.extract_strided_slice %11 {offsets = [24, 0], sizes = [8, 32], strides = [1, 1]} : vector<32x32xf32> to vector<8x32xf32>
    %cst_35 = arith.constant dense<0.000000e+00> : vector<8x32xf32>
    %87 = tpu.matmul %85, %86, %cst_35 {dimension_numbers = #tpu.dot_dimension_numbers<[1], [0], [0], [1], [0, 0, 1, 1], [], []>} : vector<8x8xf32>, vector<8x32xf32>, vector<8x32xf32> -> vector<8x32xf32>
    %88 = arith.addf %69, %87 : vector<8x32xf32>
    %89 = arith.addf %4, %88 : vector<8x32xf32>
    %c0_36 = arith.constant 0 : index
    %c0_37 = arith.constant 0 : index
    %90 = vector.load %arg9[%c0_36, %c0_37] : memref<1x32xf32, #tpu.memory_space<vmem>>, vector<1x32xf32>
    %91 = vector.broadcast %90 : vector<1x32xf32> to vector<8x32xf32>
    %92 = arith.addf %89, %91 : vector<8x32xf32>
    %c0_38 = arith.constant 0 : index
    %c0_39 = arith.constant 0 : index
    %93 = vector.load %arg10[%c0_38, %c0_39] : memref<1x32xf32, #tpu.memory_space<vmem>>, vector<1x32xf32>
    %c0_40 = arith.constant 0 : index
    %c0_41 = arith.constant 0 : index
    %94 = vector.load %arg11[%c0_40, %c0_41] : memref<1x32xf32, #tpu.memory_space<vmem>>, vector<1x32xf32>
    %cst_42 = arith.constant dense<0.000000e+00> : vector<8xf32>
    %95 = vector.multi_reduction <add>, %92, %cst_42 [1] : vector<8x32xf32> to vector<8xf32>
    %96 = vector.shape_cast %95 : vector<8xf32> to vector<8x1xf32>
    %97 = arith.mulf %92, %92 : vector<8x32xf32>
    %cst_43 = arith.constant dense<0.000000e+00> : vector<8xf32>
    %98 = vector.multi_reduction <add>, %97, %cst_43 [1] : vector<8x32xf32> to vector<8xf32>
    %99 = vector.shape_cast %98 : vector<8xf32> to vector<8x1xf32>
    %cst_44 = arith.constant 3.125000e-02 : f32
    %100 = vector.broadcast %cst_44 : f32 to vector<8x1xf32>
    %101 = arith.mulf %96, %100 : vector<8x1xf32>
    %cst_45 = arith.constant 3.125000e-02 : f32
    %102 = vector.broadcast %cst_45 : f32 to vector<8x1xf32>
    %103 = arith.mulf %99, %102 : vector<8x1xf32>
    %104 = arith.mulf %101, %101 : vector<8x1xf32>
    %105 = arith.subf %103, %104 : vector<8x1xf32>
    %106 = vector.broadcast %101 : vector<8x1xf32> to vector<8x32xf32>
    %107 = arith.subf %92, %106 : vector<8x32xf32>
    %cst_46 = arith.constant 9.99999974E-6 : f32
    %108 = vector.broadcast %cst_46 : f32 to vector<8x1xf32>
    %109 = arith.addf %105, %108 : vector<8x1xf32>
    %110 = math.rsqrt %109 : vector<8x1xf32>
    %111 = vector.broadcast %110 : vector<8x1xf32> to vector<8x32xf32>
    %112 = arith.mulf %107, %111 : vector<8x32xf32>
    %113 = vector.broadcast %93 : vector<1x32xf32> to vector<8x32xf32>
    %114 = arith.mulf %112, %113 : vector<8x32xf32>
    %115 = vector.broadcast %94 : vector<1x32xf32> to vector<8x32xf32>
    %116 = arith.addf %114, %115 : vector<8x32xf32>
    %c0_47 = arith.constant 0 : index
    %c0_48 = arith.constant 0 : index
    %c0_49 = arith.constant 0 : index
    %117 = vector.load %arg12[%c0_47, %c0_48, %c0_49] : memref<1x8x32xf32, #tpu.memory_space<vmem>>, vector<1x8x32xf32>
    %118 = vector.shape_cast %117 : vector<1x8x32xf32> to vector<8x32xf32>
    %119 = vector.shape_cast %116 : vector<8x32xf32> to vector<1x8x32xf32>
    tpu.vector_store %arg12[%c0_47, %c0_48, %c0_49], %119 {strides = array<i32>} : memref<1x8x32xf32, #tpu.memory_space<vmem>>, vector<1x8x32xf32>,
    return
  }
  func.func @transform_0(%arg0: i32, %arg1: i32) -> (i32, i32, i32) {
    %c0_i32 = arith.constant 0 : i32
    %c0_i32_0 = arith.constant 0 : i32
    return %arg0, %arg1, %c0_i32 : i32, i32, i32
  }
  func.func @transform_1(%arg0: i32, %arg1: i32) -> (i32, i32, i32) {
    %c0_i32 = arith.constant 0 : i32
    %c0_i32_0 = arith.constant 0 : i32
    %c0_i32_1 = arith.constant 0 : i32
    return %arg0, %c0_i32, %c0_i32_0 : i32, i32, i32
  }
  func.func @transform_2(%arg0: i32, %arg1: i32) -> (i32, i32) {
    %c0_i32 = arith.constant 0 : i32
    %c0_i32_0 = arith.constant 0 : i32
    %c0_i32_1 = arith.constant 0 : i32
    return %c0_i32, %c0_i32_0 : i32, i32
  }
  func.func @transform_3(%arg0: i32, %arg1: i32) -> (i32, i32) {
    %c0_i32 = arith.constant 0 : i32
    %c0_i32_0 = arith.constant 0 : i32
    %c0_i32_1 = arith.constant 0 : i32
    return %c0_i32, %c0_i32_0 : i32, i32
  }
  func.func @transform_4(%arg0: i32, %arg1: i32) -> (i32, i32) {
    %c0_i32 = arith.constant 0 : i32
    %c0_i32_0 = arith.constant 0 : i32
    %c0_i32_1 = arith.constant 0 : i32
    return %c0_i32, %c0_i32_0 : i32, i32
  }
  func.func @transform_5(%arg0: i32, %arg1: i32) -> (i32, i32) {
    %c0_i32 = arith.constant 0 : i32
    %c0_i32_0 = arith.constant 0 : i32
    %c0_i32_1 = arith.constant 0 : i32
    return %c0_i32, %c0_i32_0 : i32, i32
  }
  func.func @transform_6(%arg0: i32, %arg1: i32) -> (i32, i32) {
    %c0_i32 = arith.constant 0 : i32
    %c0_i32_0 = arith.constant 0 : i32
    %c0_i32_1 = arith.constant 0 : i32
    return %c0_i32, %c0_i32_0 : i32, i32
  }
  func.func @transform_7(%arg0: i32, %arg1: i32) -> (i32, i32) {
    %c0_i32 = arith.constant 0 : i32
    %c0_i32_0 = arith.constant 0 : i32
    %c0_i32_1 = arith.constant 0 : i32
    return %c0_i32, %c0_i32_0 : i32, i32
  }
  func.func @transform_8(%arg0: i32, %arg1: i32) -> (i32, i32) {
    %c0_i32 = arith.constant 0 : i32
    %c0_i32_0 = arith.constant 0 : i32
    %c0_i32_1 = arith.constant 0 : i32
    return %c0_i32, %c0_i32_0 : i32, i32
  }
  func.func @transform_9(%arg0: i32, %arg1: i32) -> (i32, i32) {
    %c0_i32 = arith.constant 0 : i32
    %c0_i32_0 = arith.constant 0 : i32
    %c0_i32_1 = arith.constant 0 : i32
    return %c0_i32, %c0_i32_0 : i32, i32
  }
  func.func @transform_10(%arg0: i32, %arg1: i32) -> (i32, i32, i32) {
    %c0_i32 = arith.constant 0 : i32
    %c0_i32_0 = arith.constant 0 : i32
    return %arg0, %arg1, %c0_i32 : i32, i32, i32
  }
}

</mosaic_0001>

<bundles_post_ra>
// kernel: decoder_forward.13
= control target key start
LH: loop header
LB: loop body
LE: loop exit
PB: predicated region body
PF: predicated region fallthrough
CT: control target
= control target key end

     0   :  { %vm28_vm0 = vcmask 261120   ;;  %s240_s0 = inlined_call_operand.vmem [shape: f32[16,32], index: 0, kind: input, shape index: {}]   ;;  %s241_s1 = inlined_call_operand.vmem [shape: f32[32,64], index: 1, kind: input, shape index: {}]   ;;  %s242_s2 = inlined_call_operand.vmem [shape: f32[1,64], index: 2, kind: input, shape index: {}]   ;;  %s243_s3 = inlined_call_operand.hbm [shape: f32[16,64], index: 3, kind: output, shape index: {}]  }
   0x1   :  { %v17_v0 = vld [vmem:[%s241_s1] sm:$0xff]  ;;  %v18_v1 = vld [vmem:[%s241_s1 + $0x8] sm:$0xff]  ;;  %v19_v2 = vld [vmem:[%s241_s1 + $0x10] sm:$0xff] }
   0x2   :  { %v149_v3 = vpack.c.bf16 %v18_v1, %v17_v0  ;;  %v20_v4 = vld [vmem:[%s241_s1 + $0x18] sm:$0xff]  ;;  %v15_v5 = vld [vmem:[%s240_s0] sm:$0xff] }
   0x3   :  { %v153_v6 = vpack.c.bf16 %v20_v4, %v19_v2  ;;  %146 = vmatprep.mubr.msk.f32.mxu0 %vm28_vm0, %v15_v5 }
   0x4   :  { %8 = vsyncpa [#allocation3], 0  ;;  %150 = vmatprep.subr.bf16.mxu0 %v149_v3  ;;  %v16_v7 = vld [vmem:[%s240_s0 + $0x8] sm:$0xff]  ;;  %v129_v8 = vld [vmem:[%s242_s2] ss:$0 sm:$0xff]  ;;  %s184_s1 = smov [#allocation2]  }
   0x5   :  { %152 = vmatpush3.bf16.msra.mxu0 %v149_v3  ;;  %s118_s26 = sshll.u32 %s184_s1, 4  ;;  %vm110_vm1 = vcmask 523264   ;;  %s119_s26 = int_to_ptr.vmem [resolvable:$true] %s118_s26 }
   0x6   :  { %154 = vmatprep.subr.bf16.mxu0 %v153_v6  ;;  %s160_s27 = scalar_lea.vmem %s119_s26, 256  ;;  %p165_p1 = scmp.lt.s32.totalorder %s119_s26, %s119_s26 }
   0x7   :  { %p161_p0 = scmp.ne.s32.totalorder %s119_s26, %s160_s27  ;;  %p166_p2 = scmp.lt.s32.totalorder %s160_s27, %s160_s27 }
   0x9   :  { %156 = vmatpush3.bf16.msra.mxu0 %v153_v6  ;;  %p167_p3 = por %p166_p2, %p165_p1 }
   0xb   :  { %p168_p4 = pnand %p167_p3, %p161_p0 }
   0xc   :  { %147 = vmatmul.mubr.msk.f32.vlgmr.msra.gmra.mrb[0].mxu0 %vm28_vm0, %v16_v7 }
  0xdf   :  { %v148_v9 = vpop.f32.mrb[0].mxu0 }
  0xe0   :  { %v107_v10 = vadd.f32 %v148_v9, %v129_v8  ;;  %v101_v11 = vpop.f32.mrb[1].mxu0 }
  0xe1   :  { %v102_v12 = vadd.f32 %v129_v8, %v101_v11 }
  0xe2   :  { %112 = vst.msk [vmem:[#allocation2 + $0x8] sm:$0xff] %vm110_vm1, %v107_v10 }
  0xe3   :  { %111 = vst.msk [vmem:[#allocation2] sm:$0xff] %vm110_vm1, %v102_v12 }
  0xe4   :  { %171 = shalt.err (!%p168_p4)
}
  0xe5   :  { %s172_s2 = scalar_lea.hbm %s243_s3, 256 }
  0xe6   :  { %p173_p5 = scmp.ne.s32.totalorder %s243_s3, %s172_s2  ;;  %p176_p6 = scmp.lt.u32.totalorder %s172_s2, %s243_s3 }
  0xe8   :  { %p178_p7 = pnand %p176_p6, %p173_p5 }
  0xea   :  { %181 = shalt.err (!%p178_p7)
}
  0xeb   :  { %s185_s6 = smov 128   ;;  %s186_s7 = smov 8  }
  0xec   :  { %124 = dma.vmem_to_hbm [thread:$0]  %s119_s26, 256, %s243_s3, [#allocation3], %s185_s6, %s185_s6, %s186_s7  }
  0xed   :  { %182 = dma.done.wait [#allocation3], 256  }
  0xee   :  { %183 = vsyncadd [#allocation3], 4294967040 }
  0xef   :  { %128 = vsyncpa [#allocation3], 1 }

// kernel: decoder_forward.9
= control target key start
LH: loop header
LB: loop body
LE: loop exit
PB: predicated region body
PF: predicated region fallthrough
CT: control target
= control target key end

     0   :  { %vm39_vm0 = vcmask 261120   ;;  %vm138_vm1 = vcmask 523264   ;;  %s466_s1 = inlined_call_operand.vmem [shape: f32[32,64], index: 1, kind: input, shape index: {}]   ;;  %s467_s0 = inlined_call_operand.vmem [shape: f32[16,32], index: 0, kind: input, shape index: {}]   ;;  %s468_s3 = inlined_call_operand.vmem [shape: f32[64,32], index: 3, kind: input, shape index: {}]   ;;  %s469_s2 = inlined_call_operand.vmem [shape: f32[1,64], index: 2, kind: input, shape index: {}]   ;;  %s470_s4 = inlined_call_operand.vmem [shape: f32[1,32], index: 4, kind: input, shape index: {}]   ;;  %s471_s5 = inlined_call_operand.vmem [shape: f32[1,32], index: 5, kind: input, shape index: {}]   ;;  %s472_s6 = inlined_call_operand.vmem [shape: f32[1,32], index: 6, kind: input, shape index: {}]   ;;  %s473_s7 = inlined_call_operand.vmem [shape: f32[16,32], index: 7, kind: output, shape index: {}]  }
   0x1   :  { %v28_v0 = vld [vmem:[%s466_s1] sm:$0xff]  ;;  %v29_v1 = vld [vmem:[%s466_s1 + $0x8] sm:$0xff]  ;;  %v30_v2 = vld [vmem:[%s466_s1 + $0x10] sm:$0xff] }
   0x2   :  { %v330_v3 = vpack.c.bf16 %v29_v1, %v28_v0  ;;  %v31_v4 = vld [vmem:[%s466_s1 + $0x18] sm:$0xff]  ;;  %v26_v5 = vld [vmem:[%s467_s0] sm:$0xff]  ;;  %v124_v8 = vld [vmem:[%s468_s3 + $0x8] sm:$0xff] }
   0x3   :  { %v334_v6 = vpack.c.bf16 %v31_v4, %v30_v2  ;;  %308 = vmatprep.mubr.msk.f32.mxu0 %vm39_vm0, %v26_v5  ;;  %v123_v7 = vld [vmem:[%s468_s3] sm:$0xff]  ;;  %v125_v9 = vld [vmem:[%s468_s3 + $0x10] sm:$0xff]  ;;  %v126_v11 = vld [vmem:[%s468_s3 + $0x18] sm:$0xff] }
   0x4   :  { %331 = vmatprep.subr.bf16.mxu0 %v330_v3  ;;  %v338_v10 = vpack.c.bf16 %v124_v8, %v123_v7  ;;  %v342_v12 = vpack.c.bf16 %v126_v11, %v125_v9  ;;  %v127_v13 = vld [vmem:[%s468_s3 + $0x20] sm:$0xff]  ;;  %v128_v14 = vld [vmem:[%s468_s3 + $0x28] sm:$0xff]  ;;  %v129_v17 = vld [vmem:[%s468_s3 + $0x30] sm:$0xff] }
   0x5   :  { %333 = vmatpush3.bf16.msra.mxu0 %v330_v3  ;;  %v346_v15 = vpack.c.bf16 %v128_v14, %v127_v13  ;;  %v27_v16 = vld [vmem:[%s467_s0 + $0x8] sm:$0xff]  ;;  %v130_v18 = vld [vmem:[%s468_s3 + $0x38] sm:$0xff]  ;;  %v276_v20 = vld [vmem:[%s469_s2] ss:$0 sm:$0xff] }
   0x6   :  { %335 = vmatprep.subr.bf16.mxu0 %v334_v6  ;;  %339 = vmatprep.subr.bf16.mxu1 %v338_v10  ;;  %v350_v19 = vpack.c.bf16 %v130_v18, %v129_v17  ;;  %v279_v27 = vld [vmem:[%s470_s4] ss:$0 sm:$0xff] }
   0x7   :  { %341 = vmatpush3.bf16.msra.mxu1 %v338_v10  ;;  %v282_v56 = vld [vmem:[%s471_s5] ss:$0 sm:$0xff] }
   0x8   :  { %343 = vmatprep.subr.bf16.mxu1 %v342_v12  ;;  %v283_v58 = vld [vmem:[%s472_s6] ss:$0 sm:$0xff] }
   0x9   :  { %337 = vmatpush3.bf16.msra.mxu0 %v334_v6 }
   0xb   :  { %345 = vmatpush3.bf16.msra.mxu1 %v342_v12 }
   0xc   :  { %309 = vmatmul.mubr.msk.f32.vlgmr.msra.gmra.mrb[0].mxu0 %vm39_vm0, %v27_v16  ;;  %347 = vmatprep.subr.bf16.mxu1 %v346_v15 }
   0xf   :  { %349 = vmatpush3.bf16.msra.mxu1 %v346_v15 }
  0x10   :  { %351 = vmatprep.subr.bf16.mxu1 %v350_v19 }
  0x13   :  { %353 = vmatpush3.bf16.msra.mxu1 %v350_v19 }
  0xdf   :  { %v310_v21 = vpop.f32.mrb[0].mxu0 }
  0xe0   :  { %v118_v22 = vadd.f32 %v310_v21, %v276_v20  ;;  %v112_v23 = vpop.f32.mrb[1].mxu0 }
  0xe1   :  { %v113_v24 = vadd.f32 %v276_v20, %v112_v23 }
  0xe2   :  { %v122_v26 = vmax.f32 %v118_v22, 0.0 }
  0xe3   :  { %v121_v25 = vmax.f32 %v113_v24, 0.0 }
  0xe5   :  { %327 = vmatprep.mubr.msk.f32.mxu1 %vm138_vm1, %v121_v25 }
  0xe6   :  { %328 = vmatmul.mubr.msk.f32.vlgmr.msra.gmra.mrb[0].mxu1 %vm138_vm1, %v122_v26 }
 0x1b9   :  { %v329_v28 = vpop.f32.mrb[0].mxu1 }
 0x1ba   :  { %v217_v29 = vadd.f32 %v329_v28, %v279_v27  ;;  %v211_v30 = vpop.f32.mrb[1].mxu1 }
 0x1bb   :  { %v212_v31 = vadd.f32 %v279_v27, %v211_v30 }
 0x1bc   :  { %v221_v32 = vadd.f32 %v217_v29, %v27_v16 }
 0x1bd   :  { %v220_v33 = vadd.f32 %v212_v31, %v26_v5 }
 0x1be   :  { %v231_v37 = vmul.f32 %v221_v32, %v221_v32  ;;  %v227_v38 = vsel %vm39_vm0, %v221_v32, 0.0 }
 0x1bf   :  { %v224_v34 = vsel %vm39_vm0, %v220_v33, 0.0  ;;  %v230_v35 = vmul.f32 %v220_v33, %v220_v33 }
 0x1c0   :  { %225 = vadd.xlane.f32.xlu0 %v224_v34  ;;  %v235_v39 = vsel %vm39_vm0, %v231_v37, 0.0 }
 0x1c1   :  { %v232_v36 = vsel %vm39_vm0, %v230_v35, 0.0 }
 0x1c2   :  { %233 = vadd.xlane.f32.xlu1 %v232_v36 }
 0x1c4   :  { %228 = vadd.xlane.f32.xlu0 %v227_v38 }
 0x1c6   :  { %236 = vadd.xlane.f32.xlu1 %v235_v39 }
 0x24d   :  { %v226_v40 = vpop.xlane.xlu0 %225 }
 0x24e   :  { %v238_v41 = vmul.f32 0.03125, %v226_v40 }
 0x24f   :  { %v234_v42 = vpop.xlane.xlu1 %233 }
 0x250   :  { %v242_v43 = vmul.f32 %v238_v41, %v238_v41  ;;  %v240_v44 = vmul.f32 0.03125, %v234_v42  ;;  %v246_v54 = vsub.f32 %v220_v33, %v238_v41 }
 0x251   :  { %v229_v45 = vpop.xlane.xlu0 %228 }
 0x252   :  { %v244_v46 = vsub.f32 %v240_v44, %v242_v43  ;;  %v239_v47 = vmul.f32 0.03125, %v229_v45 }
 0x253   :  { %v237_v48 = vpop.xlane.xlu1 %236 }
 0x254   :  { %v248_v49 = vadd.f32 1e-05, %v244_v46  ;;  %v243_v50 = vmul.f32 %v239_v47, %v239_v47  ;;  %v241_v51 = vmul.f32 0.03125, %v237_v48  ;;  %v247_v60 = vsub.f32 %v221_v32, %v239_v47 }
 0x256   :  { %354 = vrsqrt.f32 %v248_v49  ;;  %v245_v52 = vsub.f32 %v241_v51, %v243_v50 }
 0x258   :  { %v249_v53 = vadd.f32 1e-05, %v245_v52 }
 0x25a   :  { %356 = vrsqrt.f32 %v249_v53 }
 0x260   :  { %v355_v55 = vpop.eup %354 }
 0x261   :  { %v252_v57 = vmul.f32 %v355_v55, %v246_v54 }
 0x263   :  { %v260_v59 = vmul.f32 %v282_v56, %v252_v57 }
 0x264   :  { %v357_v61 = vpop.eup %356 }
 0x265   :  { %v268_v62 = vadd.f32 %v283_v58, %v260_v59  ;;  %v253_v63 = vmul.f32 %v357_v61, %v247_v60 }
 0x267   :  { %270 = vst.msk [vmem:[%s473_s7] sm:$0xff] %vm39_vm0, %v268_v62  ;;  %v261_v0 = vmul.f32 %v282_v56, %v253_v63 }
 0x269   :  { %v269_v1 = vadd.f32 %v283_v58, %v261_v0 }
 0x26b   :  { %271 = vst.msk [vmem:[%s473_s7 + $0x8] sm:$0xff] %vm39_vm0, %v269_v1 }

// kernel: decoder_forward.7
= control target key start
LH: loop header
LB: loop body
LE: loop exit
PB: predicated region body
PF: predicated region fallthrough
CT: control target
= control target key end

     0   :  { %s1910_s30 = smov 0   ;;  %s1912_s10 = smov 0   ;;  %s2095_s0 = inlined_call_operand.vmem [shape: f32[2,8,32], index: 0, kind: input, shape index: {}]   ;;  %s2096_s1 = inlined_call_operand.vmem [shape: f32[32,32], index: 1, kind: input, shape index: {}]   ;;  %s2097_s2 = inlined_call_operand.vmem [shape: f32[1,32], index: 2, kind: input, shape index: {}]   ;;  %s2098_s3 = inlined_call_operand.vmem [shape: f32[32,64], index: 3, kind: input, shape index: {}]   ;;  %s2099_s4 = inlined_call_operand.vmem [shape: f32[1,64], index: 4, kind: input, shape index: {}]   ;;  %s2100_s5 = inlined_call_operand.vmem [shape: f32[32,32], index: 5, kind: input, shape index: {}]   ;;  %s2101_s6 = inlined_call_operand.vmem [shape: f32[1,32], index: 6, kind: input, shape index: {}]   ;;  %s2102_s7 = inlined_call_operand.vmem [shape: f32[1,32], index: 7, kind: input, shape index: {}]   ;;  %s2103_s8 = inlined_call_operand.vmem [shape: f32[1,32], index: 8, kind: input, shape index: {}]   ;;  %s2104_s9 = inlined_call_operand.vmem [shape: f32[2,8,32], index: 9, kind: output, shape index: {}]  }
   0x1   :  { %s1914_s11 = smov 0  }
   0x2 LB: > { %s31_s12 = sadd.s32 1, %s1844_s10  ;;  %p1618_p0 = scmp.ge.s32.totalorder %s1848_s11, 1  ;;  %s1848_s11 = sphi %s1914_s11, %s19_s11   ;;  %s1844_s10 = sphi %s1912_s10, %s2106_s10   ;;  %s1840_s30 = sphi %s1910_s30, %s2105_s30  }
   0x3   : > { %p33_p1 = scmp.ge.s32.totalorder %s31_s12, 2  ;;  %p305_p2 = scmp.lt.s32.totalorder %s1848_s11, 3 }
   0x5   : > { %s2108_s12 = smov (%p33_p1, %s31_s12), 0  ;;  %p306_p3 = pnand %p1618_p0, %p305_p2 }
   0x6   : > { %v364_v0 = vld [vmem:[%s2098_s3] sm:$0xff] (!%p306_p3)  ;;  %v365_v1 = vld [vmem:[%s2098_s3 + $0x8] sm:$0xff] (!%p306_p3)  ;;  %v366_v2 = vld [vmem:[%s2098_s3 + $0x10] sm:$0xff] (!%p306_p3)  ;;  %v1850_v3 = vmov (!%p306_p3), 0.0|0.0   ;;  %vm1851_vm0 = vmmov (!%p306_p3), 0   ;;  %v1852_v6 = vmov (!%p306_p3), 0.0  }
   0x7   : > { %309 = sbr.rel (%p306_p3) target bundleno = 2762 (0xaca), region = 56  ;;  %1762 = vmatprep.subr.bf16.mxu0 (!%p306_p3), %v1850_v3  ;;  %v1763_v4 = vpack.c.bf16 (!%p306_p3), %v365_v1, %v364_v0  ;;  %v367_v5 = vld [vmem:[%s2098_s3 + $0x18] sm:$0xff] (!%p306_p3)  ;;  %1688 = vmatprep.mubr.msk.f32.mxu0 (!%p306_p3), %vm1851_vm0, %v1852_v6  ;;  %p345_p4 = scmp.lt.s32.totalorder (!%p306_p3), %s1840_s30, 1  ;;  %v452_v7 = vld [vmem:[%s2096_s1] sm:$0xff] (!%p306_p3)  ;;  %v453_v8 = vld [vmem:[%s2096_s1 + $0x8] sm:$0xff] (!%p306_p3)  ;;  %vm375_vm1 = vcmask (!%p306_p3), 261120  }
   0x8   : > { %1768 = vmatprep.subr.bf16.mxu1 (!%p306_p3), %v1850_v3  ;;  %v1769_v9 = vpack.c.bf16 (!%p306_p3), %v453_v8, %v452_v7  ;;  %v454_v10 = vld [vmem:[%s2096_s1 + $0x10] sm:$0xff] (!%p306_p3)  ;;  %v455_v11 = vld [vmem:[%s2096_s1 + $0x18] sm:$0xff] (!%p306_p3)  ;;  %1699 = vmatprep.mubr.msk.f32.mxu1 (!%p306_p3), %vm1851_vm0, %v1852_v6  ;;  %v1766_v12 = vpack.c.bf16 (!%p306_p3), %v367_v5, %v366_v2  ;;  %v1621_v15 = vld [vmem:[%s2099_s4] ss:$0 sm:$0xff] (!%p306_p3)  ;;  %vm449_vm2 = vcmask (!%p306_p3), 523264   ;;  %vm542_vm3 = vcmask (!%p306_p3), 64512  }
   0x9   : > { %1764 = vmatpush3.bf16.msra.mxu0 (!%p306_p3), %v1763_v4  ;;  %v1772_v13 = vpack.c.bf16 (!%p306_p3), %v455_v11, %v454_v10  ;;  %v1623_v21 = vld [vmem:[%s2097_s2] ss:$0 sm:$0xff] (!%p306_p3)  ;;  %s1853_s20 = smov (!%p306_p3), 120   ;;  %s1854_s21 = smov (!%p306_p3), 96   ;;  %v539_v48 = vld [vmem:[%s2100_s5 + $0x8] sm:$0xff] (!%p306_p3) }
   0xa   : > { %1765 = vmatprep.subr.bf16.mxu0 (!%p306_p3), %v1850_v3  ;;  %1770 = vmatpush3.bf16.msra.mxu1 (!%p306_p3), %v1769_v9  ;;  %s1855_s22 = smov (!%p306_p3), 88   ;;  %s1856_s23 = smov (!%p306_p3), 112   ;;  %v538_v53 = vld [vmem:[%s2100_s5] sm:$0xff] (!%p306_p3) }
   0xb   : > { %1771 = vmatprep.subr.bf16.mxu1 (!%p306_p3), %v1850_v3  ;;  %s1857_s28 = smov (!%p306_p3), 80   ;;  %s1858_s13 = smov (!%p306_p3), 104  }
   0xc   : > { %s1859_s16 = smov (!%p306_p3), 72  }
   0xd   : > { %1767 = vmatpush3.bf16.msra.mxu0 (!%p306_p3), %v1766_v12 }
   0xe   : > { %s2110_s30 = smov (!%p345_p4, %s1840_s30), 1  ;;  %1773 = vmatpush3.bf16.msra.mxu1 %v1772_v13  ;;  %1702 = vmatprep.subr.mxu0 %v1852_v6 }
   0xf   : > { %s1619_s29 = sshll.u32 %s2110_s30, 3  ;;  %1707 = vmatprep.subr.mxu1 %v1852_v6 }
  0x10   : > { %s351_s15 = scalar_lea.vmem %s2095_s0, %s1619_s29  ;;  %s358_s27 = scalar_lea.vmem %s2104_s9, %s1619_s29 }
  0x11   : > { %v1968_v14 = vld [vmem:[%s351_s15] sm:$0xff] }
  0x12   : > { %1689 = vmatmul.mubr.msk.f32.vlgmr.msra.gmra.mrb[0].mxu0 %vm375_vm1, %v1968_v14  ;;  %1700 = vmatmul.mubr.msk.f32.vlgmr.msra.gmra.mrb[0].mxu1 %vm375_vm1, %v1968_v14 }
  0x13   : > { %1704 = vmatprep.mubr.msk.f32.mxu0 %vm1851_vm0, %v1852_v6  ;;  %1709 = vmatprep.mubr.msk.f32.mxu1 %vm1851_vm0, %v1852_v6 }
  0xe5   : > { %v445_v16 = vpop.f32.mrb[0].mxu0  ;;  %v533_v19 = vpop.f32.mrb[0].mxu1 }
  0xe6   : > { %v446_v17 = vadd.f32 %v1621_v15, %v445_v16  ;;  %v1690_v18 = vpop.f32.mrb[1].mxu0  ;;  %v1701_v20 = vpop.f32.mrb[1].mxu1  ;;  %v1986_v22 = vadd.f32 %v1623_v21, %v533_v19 }
  0xe7   : > { %v540_v18 = vld [vmem:[%s2100_s5 + $0x10] sm:$0xff] }
  0xe8   : > { %450 = vst.msk [vmem:[#allocation2] sm:$0xff] %vm449_vm2, %v446_v17 }
  0xef   : > { %v1988_v23 = vld [vmem:[#allocation2] sm:$0xff] }
  0xf0   : > { %709 = vrot.lane.b32.xlu0 %v1988_v23, %s1853_s20  ;;  %1703 = vmatpush3.xpose.msk.msra.mxu0 %vm542_vm3, %v1988_v23 }
  0xf1   : > { %1712 = vmatprep.subr.mxu0 %v1852_v6 }
  0xf3   : > { %1705 = vmatmul.mubr.msk.f32.vlgmr.msra.gmra.mrb[2].mxu0 %vm542_vm3, %v1986_v22 }
  0xf4   : > { %707 = vrot.lane.b32.xlu0 %v1986_v22, %s1853_s20  ;;  %1714 = vmatprep.mubr.msk.f32.mxu0 %vm1851_vm0, %v1852_v6 }
 0x162   : > { %v710_v24 = vpop.permute.xlu0 %709 }
 0x163   : > { %1713 = vmatpush3.xpose.msk.msra.mxu0 %vm542_vm3, %v710_v24 }
 0x164   : > { %1722 = vmatprep.subr.mxu0 %v1852_v6 }
 0x166   : > { %v708_v25 = vpop.permute.xlu0 %707 }
 0x167   : > { %1715 = vmatmul.mubr.msk.f32.vlgmr.msra.gmra.mrb[4].mxu0 %vm542_vm3, %v708_v25 }
 0x168   : > { %1724 = vmatprep.mubr.msk.f32.mxu0 %vm1851_vm0, %v1852_v6  ;;  %1723 = vmatpush3.msra.mxu0 %v539_v48 }
 0x169   : > { %1732 = vmatprep.subr.mxu0 %v1852_v6 }
 0x1c6   : > { %v615_v26 = vpop.f32.mrb[2].mxu0 }
 0x1c7   : > { %v619_v27 = vmul.f32 0.35355338, %v615_v26  ;;  %v1706_v28 = vpop.f32.mrb[3].mxu0 }
 0x1c9   : > { %v620_v29 = vsel %vm542_vm3, %v619_v27, -inf }
 0x1ca   : > { %621 = vmax.xlane.f32.xlu1 %v620_v29 }
 0x23a   : > { %v781_v30 = vpop.f32.mrb[4].mxu0 }
 0x23b   : > { %v785_v31 = vmul.f32 0.35355338, %v781_v30  ;;  %v1716_v32 = vpop.f32.mrb[5].mxu0 }
 0x23d   : > { %v786_v33 = vsel %vm542_vm3, %v785_v31, -inf }
 0x23e   : > { %787 = vmax.xlane.f32.xlu1 %v786_v33 }
 0x24f   : > { %631 = vrot.lane.b32.xlu1 %v1988_v23, %s1854_s21 }
 0x257   : > { %v622_v34 = vpop.xlane.xlu1 %621 }
 0x258   : > { %v623_v35 = vsub.f32 %v619_v27, %v622_v34 }
 0x25a   : > { %v624_v36 = vmul.f32 1.442695, %v623_v35 }
 0x25c   : > { %1808 = vpow2.f32 %v624_v36 }
 0x266   : > { %v1809_v37 = vpop.eup %1808 }
 0x267   : > { %v626_v38 = vsel %vm542_vm3, %v1809_v37, 0.0 }
 0x268   : > { %627 = vadd.xlane.f32.xlu0 %v626_v38 }
 0x2cb   : > { %v788_v39 = vpop.xlane.xlu1 %787 }
 0x2cc   : > { %v789_v40 = vsub.f32 %v785_v31, %v788_v39 }
 0x2ce   : > { %v790_v41 = vmul.f32 1.442695, %v789_v40 }
 0x2cf   : > { %v632_v42 = vpop.permute.xlu1 %631 }
 0x2d0   : > { %1810 = vpow2.f32 %v790_v41  ;;  %1708 = vmatpush3.msra.mxu1 %v632_v42  ;;  %v1641_v42 = vld [vmem:[%s2101_s6] ss:$0 sm:$0xff] }
 0x2d1   : > { %1717 = vmatprep.subr.mxu1 %v1852_v6 }
 0x2da   : > { %v1811_v43 = vpop.eup %1810 }
 0x2db   : > { %v792_v44 = vsel %vm542_vm3, %v1811_v43, 0.0 }
 0x2dc   : > { %793 = vadd.xlane.f32.xlu1 %v792_v44 }
 0x2ed   : > { %797 = vrot.lane.b32.xlu1 %v1988_v23, %s1855_s22 }
 0x2f1   : > { %1021 = vrot.lane.b32.xlu1 %v1988_v23, %s1856_s23 }
 0x2f5   : > { %v628_v45 = vpop.xlane.xlu0 %627  ;;  %1019 = vrot.lane.b32.xlu1 %v1986_v22, %s1856_s23 }
 0x2f6   : > { %1812 = vrcp.f32 %v628_v45 }
 0x300   : > { %v1813_v46 = vpop.eup %1812 }
 0x301   : > { %v630_v47 = vmul.f32 %v1813_v46, %v1809_v37 }
 0x303   : > { %1710 = vmatmul.mubr.msk.f32.vlgmr.msra.gmra.mrb[2].mxu1 %vm542_vm3, %v630_v47 }
 0x304   : > { %1719 = vmatprep.mubr.msk.f32.mxu1 %vm1851_vm0, %v1852_v6 }
 0x369   : > { %v794_v49 = vpop.xlane.xlu1 %793 }
 0x36a   : > { %1814 = vrcp.f32 %v794_v49 }
 0x36d   : > { %v798_v50 = vpop.permute.xlu1 %797 }
 0x36e   : > { %1718 = vmatpush3.msra.mxu1 %v798_v50 }
 0x36f   : > { %1727 = vmatprep.subr.mxu1 %v1852_v6 }
 0x371   : > { %v1022_v56 = vpop.permute.xlu1 %1021 }
 0x374   : > { %v1815_v51 = vpop.eup %1814 }
 0x375   : > { %v796_v52 = vmul.f32 %v1815_v51, %v1811_v43  ;;  %v1020_v59 = vpop.permute.xlu1 %1019 }
 0x377   : > { %1720 = vmatmul.mubr.msk.f32.vlgmr.msra.gmra.mrb[4].mxu1 %vm542_vm3, %v796_v52 }
 0x378   : > { %1728 = vmatpush3.msra.mxu1 %v538_v53  ;;  %1729 = vmatprep.mubr.msk.f32.mxu1 %vm1851_vm0, %v1852_v6 }
 0x379   : > { %1737 = vmatprep.subr.mxu1 %v1852_v6 }
 0x3d6   : > { %v703_v54 = vpop.f32.mrb[2].mxu1 }
 0x3d7   : > { %v1711_v55 = vpop.f32.mrb[3].mxu1  ;;  %1730 = vmatmul.mubr.msk.f32.vlgmr.msra.gmra.mrb[6].mxu1 %vm542_vm3, %v703_v54 }
 0x3d8   : > { %1739 = vmatprep.mubr.msk.f32.mxu1 %vm1851_vm0, %v1852_v6 }
 0x44a   : > { %v869_v57 = vpop.f32.mrb[4].mxu1 }
 0x44b   : > { %v1721_v58 = vpop.f32.mrb[5].mxu1  ;;  %1725 = vmatmul.mubr.msk.f32.vlgmr.msra.gmra.mrb[6].mxu0 %vm542_vm3, %v869_v57 }
 0x44c   : > { %1733 = vmatpush3.xpose.msk.msra.mxu0 %vm542_vm3, %v1022_v56  ;;  %1734 = vmatprep.mubr.msk.f32.mxu0 %vm1851_vm0, %v1852_v6  ;;  %v1643_v58 = vld [vmem:[%s2103_s8] ss:$0 sm:$0xff] }
 0x44d   : > { %1742 = vmatprep.subr.mxu0 %v1852_v6 }
 0x44f   : > { %1735 = vmatmul.mubr.msk.f32.vlgmr.msra.gmra.mrb[8].mxu0 %vm542_vm3, %v1020_v59 }
 0x450   : > { %1744 = vmatprep.mubr.msk.f32.mxu0 %vm1851_vm0, %v1852_v6  ;;  %1743 = vmatpush3.msra.mxu0 %v540_v18 }
 0x451   : > { %1752 = vmatprep.subr.mxu0 %v1852_v6 }
 0x4aa   : > { %v1015_v60 = vpop.f32.mrb[6].mxu1 }
 0x4ab   : > { %v1731_v61 = vpop.f32.mrb[7].mxu1 }
 0x51e   : > { %v942_v62 = vpop.f32.mrb[6].mxu0 }
 0x51f   : > { %v1016_v63 = vadd.f32 %v1015_v60, %v942_v62  ;;  %v1726_v0 = vpop.f32.mrb[7].mxu0 }
 0x522   : > { %v1093_v1 = vpop.f32.mrb[8].mxu0 }
 0x523   : > { %v1097_v2 = vmul.f32 0.35355338, %v1093_v1  ;;  %v1736_v3 = vpop.f32.mrb[9].mxu0 }
 0x525   : > { %v1098_v4 = vsel %vm542_vm3, %v1097_v2, -inf }
 0x526   : > { %1099 = vmax.xlane.f32.xlu0 %v1098_v4 }
 0x53c   : > { %1109 = vrot.lane.b32.xlu0 %v1988_v23, %s1857_s28 }
 0x540   : > { %1261 = vrot.lane.b32.xlu0 %v1988_v23, %s1858_s13 }
 0x544   : > { %1259 = vrot.lane.b32.xlu0 %v1986_v22, %s1858_s13 }
 0x5b3   : > { %v1100_v5 = vpop.xlane.xlu0 %1099 }
 0x5b4   : > { %v1101_v7 = vsub.f32 %v1097_v2, %v1100_v5 }
 0x5b6   : > { %v1102_v8 = vmul.f32 1.442695, %v1101_v7 }
 0x5b7   : > { %v1110_v9 = vpop.permute.xlu0 %1109 }
 0x5b8   : > { %1816 = vpow2.f32 %v1102_v8  ;;  %1738 = vmatpush3.msra.mxu1 %v1110_v9 }
 0x5b9   : > { %1747 = vmatprep.subr.mxu1 %v1852_v6 }
 0x5bb   : > { %v1262_v15 = vpop.permute.xlu0 %1261 }
 0x5bf   : > { %v1260_v17 = vpop.permute.xlu0 %1259 }
 0x5c2   : > { %v1817_v10 = vpop.eup %1816 }
 0x5c3   : > { %v1104_v11 = vsel %vm542_vm3, %v1817_v10, 0.0 }
 0x5c4   : > { %1105 = vadd.xlane.f32.xlu1 %v1104_v11 }
 0x651   : > { %v1106_v12 = vpop.xlane.xlu1 %1105 }
 0x652   : > { %1818 = vrcp.f32 %v1106_v12 }
 0x65c   : > { %v1819_v13 = vpop.eup %1818 }
 0x65d   : > { %v1108_v16 = vmul.f32 %v1819_v13, %v1817_v10 }
 0x65f   : > { %1740 = vmatmul.mubr.msk.f32.vlgmr.msra.gmra.mrb[8].mxu1 %vm542_vm3, %v1108_v16 }
 0x660   : > { %1748 = vmatpush3.xpose.msk.msra.mxu1 %vm542_vm3, %v1262_v15  ;;  %1749 = vmatprep.mubr.msk.f32.mxu1 %vm1851_vm0, %v1852_v6 }
 0x661   : > { %1757 = vmatprep.subr.mxu1 %v1852_v6 }
 0x663   : > { %1750 = vmatmul.mubr.msk.f32.vlgmr.msra.gmra.mrb[10].mxu1 %vm542_vm3, %v1260_v17 }
 0x664   : > { %1759 = vmatprep.mubr.msk.f32.mxu1 %vm1851_vm0, %v1852_v6 }
 0x732   : > { %v1181_v19 = vpop.f32.mrb[8].mxu1 }
 0x733   : > { %v1741_v20 = vpop.f32.mrb[9].mxu1  ;;  %1745 = vmatmul.mubr.msk.f32.vlgmr.msra.gmra.mrb[10].mxu0 %vm542_vm3, %v1181_v19 }
 0x734   : > { %1754 = vmatprep.mubr.msk.f32.mxu0 %vm1851_vm0, %v1852_v6  ;;  %v541_v6 = vld [vmem:[%s2100_s5 + $0x18] sm:$0xff] }
 0x735   : > { %1758 = vmatpush3.msra.mxu1 %v541_v6 }
 0x736   : > { %v1333_v21 = vpop.f32.mrb[10].mxu1 }
 0x737   : > { %v1337_v22 = vmul.f32 0.35355338, %v1333_v21  ;;  %v1751_v24 = vpop.f32.mrb[11].mxu1 }
 0x739   : > { %v1338_v25 = vsel %vm542_vm3, %v1337_v22, -inf }
 0x73a   : > { %1339 = vmax.xlane.f32.xlu0 %v1338_v25 }
 0x7c7   : > { %v1340_v26 = vpop.xlane.xlu0 %1339 }
 0x7c8   : > { %v1341_v27 = vsub.f32 %v1337_v22, %v1340_v26 }
 0x7ca   : > { %v1342_v28 = vmul.f32 1.442695, %v1341_v27 }
 0x7cc   : > { %1820 = vpow2.f32 %v1342_v28 }
 0x7d6   : > { %v1821_v29 = vpop.eup %1820 }
 0x7d7   : > { %v1344_v30 = vsel %vm542_vm3, %v1821_v29, 0.0 }
 0x7d8   : > { %1345 = vadd.xlane.f32.xlu1 %v1344_v30 }
 0x7e9   : > { %1349 = vrot.lane.b32.xlu1 %v1988_v23, %s1859_s16 }
 0x806   : > { %v1254_v31 = vpop.f32.mrb[10].mxu0 }
 0x807   : > { %v1258_v32 = vadd.f32 %v1254_v31, %v1016_v63  ;;  %v1746_v33 = vpop.f32.mrb[11].mxu0 }
 0x865   : > { %v1346_v34 = vpop.xlane.xlu1 %1345 }
 0x866   : > { %1822 = vrcp.f32 %v1346_v34 }
 0x869   : > { %v1350_v35 = vpop.permute.xlu1 %1349 }
 0x86a   : > { %1753 = vmatpush3.msra.mxu0 %v1350_v35 }
 0x870   : > { %v1823_v36 = vpop.eup %1822 }
 0x871   : > { %v1348_v37 = vmul.f32 %v1823_v36, %v1821_v29 }
 0x873   : > { %1755 = vmatmul.mubr.msk.f32.vlgmr.msra.gmra.mrb[12].mxu0 %vm542_vm3, %v1348_v37 }
 0x946   : > { %v1421_v38 = vpop.f32.mrb[12].mxu0 }
 0x947   : > { %v1756_v39 = vpop.f32.mrb[13].mxu0  ;;  %1760 = vmatmul.mubr.msk.f32.vlgmr.msra.gmra.mrb[12].mxu1 %vm542_vm3, %v1421_v38 }
 0xa1a   : > { %v1494_v23 = vpop.f32.mrb[12].mxu1 }
 0xa1b   : > { %v1498_v40 = vadd.f32 %v1494_v23, %v1258_v32  ;;  %v1761_v41 = vpop.f32.mrb[13].mxu1 }
 0xa1d   : > { %v1499_v43 = vadd.f32 %v1498_v40, %v1968_v14  ;;  %v1642_v14 = vld [vmem:[%s2102_s7] ss:$0 sm:$0xff] }
 0xa1f   : > { %v1507_v44 = vadd.f32 %v1641_v42, %v1499_v43 }
 0xa21   : > { %v1510_v45 = vsel %vm375_vm1, %v1507_v44, 0.0  ;;  %v1513_v46 = vmul.f32 %v1507_v44, %v1507_v44 }
 0xa22   : > { %1511 = vadd.xlane.f32.xlu1 %v1510_v45 }
 0xa23   : > { %v1514_v47 = vsel %vm375_vm1, %v1513_v46, 0.0 }
 0xa24   : > { %1515 = vadd.xlane.f32.xlu0 %v1514_v47 }
 0xaaf   : > { %v1512_v48 = vpop.xlane.xlu1 %1511 }
 0xab0   : > { %v1517_v49 = vmul.f32 0.03125, %v1512_v48 }
 0xab1   : > { %v1516_v50 = vpop.xlane.xlu0 %1515 }
 0xab2   : > { %v1519_v51 = vmul.f32 %v1517_v49, %v1517_v49  ;;  %v1518_v52 = vmul.f32 0.03125, %v1516_v50  ;;  %v1521_v55 = vsub.f32 %v1507_v44, %v1517_v49 }
 0xab4   : > { %v1520_v53 = vsub.f32 %v1518_v52, %v1519_v51 }
 0xab6   : > { %v1522_v54 = vadd.f32 1e-05, %v1520_v53 }
 0xab8   : > { %1824 = vrsqrt.f32 %v1522_v54 }
 0xac2   : > { %v1825_v56 = vpop.eup %1824 }
 0xac3   : > { %v1524_v57 = vmul.f32 %v1825_v56, %v1521_v55 }
 0xac5   : > { %v1531_v59 = vmul.f32 %v1642_v14, %v1524_v57 }
 0xac7   : > { %v1538_v60 = vadd.f32 %v1643_v58, %v1531_v59 }
 0xac9   : > { %1539 = vst.msk [vmem:[%s358_s27] sm:$0xff] %vm375_vm1, %v1538_v60 }
 0xaca PF: > { %s19_s11 = sadd.s32 1, %s1848_s11   ;;  %s2105_s30 = smov %s1844_s10 }
 0xacb   : > { %p16_p5 = scmp.ge.s32.totalorder %s19_s11, 4   ;;  %s2106_s10 = smov %s2108_s12 }
 0xacd   :  { %18 = sbr.rel (!%p16_p5) target bundleno = 2 (0x2), region = 90 }

// kernel: decoder_forward.8
= control target key start
LH: loop header
LB: loop body
LE: loop exit
PB: predicated region body
PF: predicated region fallthrough
CT: control target
= control target key end

     0   :  { %s1972_s13 = smov 0   ;;  %s1974_s14 = smov 0   ;;  %s2157_s0 = inlined_call_operand.vmem [shape: f32[2,8,32], index: 0, kind: input, shape index: {}]   ;;  %s2158_s1 = inlined_call_operand.vmem [shape: f32[2,8,32], index: 1, kind: input, shape index: {}]   ;;  %s2159_s2 = inlined_call_operand.vmem [shape: f32[32,32], index: 2, kind: input, shape index: {}]   ;;  %s2160_s3 = inlined_call_operand.vmem [shape: f32[1,32], index: 3, kind: input, shape index: {}]   ;;  %s2161_s4 = inlined_call_operand.vmem [shape: f32[32,64], index: 4, kind: input, shape index: {}]   ;;  %s2162_s5 = inlined_call_operand.vmem [shape: f32[1,64], index: 5, kind: input, shape index: {}]   ;;  %s2163_s6 = inlined_call_operand.vmem [shape: f32[32,32], index: 6, kind: input, shape index: {}]   ;;  %s2164_s7 = inlined_call_operand.vmem [shape: f32[1,32], index: 7, kind: input, shape index: {}]   ;;  %s2165_s8 = inlined_call_operand.vmem [shape: f32[1,32], index: 8, kind: input, shape index: {}]   ;;  %s2166_s9 = inlined_call_operand.vmem [shape: f32[1,32], index: 9, kind: input, shape index: {}]   ;;  %s2167_s10 = inlined_call_operand.vmem [shape: f32[2,8,32], index: 10, kind: output, shape index: {}]  }
   0x1   :  { %s1976_s15 = smov 0  }
   0x2 LB: > { %s32_s16 = sadd.s32 1, %s1901_s14  ;;  %p1674_p0 = scmp.ge.s32.totalorder %s1905_s15, 1  ;;  %s1905_s15 = sphi %s1976_s15, %s20_s15   ;;  %s1901_s14 = sphi %s1974_s14, %s2169_s14   ;;  %s1897_s13 = sphi %s1972_s13, %s2168_s13  }
   0x3   : > { %p34_p1 = scmp.ge.s32.totalorder %s32_s16, 2  ;;  %p339_p2 = scmp.lt.s32.totalorder %s1905_s15, 3 }
   0x5   : > { %s2171_s16 = smov (%p34_p1, %s32_s16), 0  ;;  %p340_p3 = pnand %p1674_p0, %p339_p2 }
   0x6   : > { %v408_v0 = vld [vmem:[%s2161_s4] sm:$0xff] (!%p340_p3)  ;;  %v409_v1 = vld [vmem:[%s2161_s4 + $0x8] sm:$0xff] (!%p340_p3)  ;;  %v410_v2 = vld [vmem:[%s2161_s4 + $0x10] sm:$0xff] (!%p340_p3)  ;;  %v1907_v3 = vmov (!%p340_p3), 0.0|0.0   ;;  %vm1908_vm0 = vmmov (!%p340_p3), 0   ;;  %v1909_v6 = vmov (!%p340_p3), 0.0  }
   0x7   : > { %343 = sbr.rel (%p340_p3) target bundleno = 2762 (0xaca), region = 60  ;;  %1819 = vmatprep.subr.bf16.mxu0 (!%p340_p3), %v1907_v3  ;;  %v1820_v4 = vpack.c.bf16 (!%p340_p3), %v409_v1, %v408_v0  ;;  %v411_v5 = vld [vmem:[%s2161_s4 + $0x18] sm:$0xff] (!%p340_p3)  ;;  %1745 = vmatprep.mubr.msk.f32.mxu0 (!%p340_p3), %vm1908_vm0, %v1909_v6  ;;  %p385_p4 = scmp.lt.s32.totalorder (!%p340_p3), %s1897_s13, 1  ;;  %v496_v7 = vld [vmem:[%s2159_s2] sm:$0xff] (!%p340_p3)  ;;  %v497_v8 = vld [vmem:[%s2159_s2 + $0x8] sm:$0xff] (!%p340_p3)  ;;  %vm419_vm1 = vcmask (!%p340_p3), 261120  }
   0x8   : > { %1825 = vmatprep.subr.bf16.mxu1 (!%p340_p3), %v1907_v3  ;;  %v1826_v9 = vpack.c.bf16 (!%p340_p3), %v497_v8, %v496_v7  ;;  %v498_v10 = vld [vmem:[%s2159_s2 + $0x10] sm:$0xff] (!%p340_p3)  ;;  %v499_v11 = vld [vmem:[%s2159_s2 + $0x18] sm:$0xff] (!%p340_p3)  ;;  %1756 = vmatprep.mubr.msk.f32.mxu1 (!%p340_p3), %vm1908_vm0, %v1909_v6  ;;  %v1823_v12 = vpack.c.bf16 (!%p340_p3), %v411_v5, %v410_v2  ;;  %v1678_v16 = vld [vmem:[%s2162_s5] ss:$0 sm:$0xff] (!%p340_p3)  ;;  %vm493_vm2 = vcmask (!%p340_p3), 523264   ;;  %vm586_vm3 = vcmask (!%p340_p3), 64512  }
   0x9   : > { %1821 = vmatpush3.bf16.msra.mxu0 (!%p340_p3), %v1820_v4  ;;  %v1829_v13 = vpack.c.bf16 (!%p340_p3), %v499_v11, %v498_v10  ;;  %v1680_v22 = vld [vmem:[%s2160_s3] ss:$0 sm:$0xff] (!%p340_p3)  ;;  %s1910_s27 = smov (!%p340_p3), 120   ;;  %s1911_s28 = smov (!%p340_p3), 96   ;;  %v583_v49 = vld [vmem:[%s2163_s6 + $0x8] sm:$0xff] (!%p340_p3) }
   0xa   : > { %1822 = vmatprep.subr.bf16.mxu0 (!%p340_p3), %v1907_v3  ;;  %1827 = vmatpush3.bf16.msra.mxu1 (!%p340_p3), %v1826_v9  ;;  %s1912_s29 = smov (!%p340_p3), 88   ;;  %s1913_s30 = smov (!%p340_p3), 112   ;;  %v582_v54 = vld [vmem:[%s2163_s6] sm:$0xff] (!%p340_p3) }
   0xb   : > { %1828 = vmatprep.subr.bf16.mxu1 (!%p340_p3), %v1907_v3  ;;  %s1915_s21 = smov (!%p340_p3), 104  }
   0xd   : > { %1824 = vmatpush3.bf16.msra.mxu0 (!%p340_p3), %v1823_v12 }
   0xe   : > { %s2173_s13 = smov (!%p385_p4, %s1897_s13), 1  ;;  %1830 = vmatpush3.bf16.msra.mxu1 %v1829_v13  ;;  %1759 = vmatprep.subr.mxu0 %v1909_v6 }
   0xf   : > { %s2022_s17 = sshll.u32 %s2173_s13, 3  ;;  %1764 = vmatprep.subr.mxu1 %v1909_v6  ;;  %s1916_s13 = smov 72  }
  0x10   : > { %s395_s20 = scalar_lea.vmem %s2158_s1, %s2022_s17  ;;  %s391_s23 = scalar_lea.vmem %s2157_s0, %s2022_s17 }
  0x11   : > { %v407_v14 = vld [vmem:[%s395_s20] sm:$0xff]  ;;  %s1914_s20 = smov 80   ;;  %s402_s19 = scalar_lea.vmem %s2167_s10, %s2022_s17 }
  0x12   : > { %v2032_v15 = vld [vmem:[%s391_s23] sm:$0xff]  ;;  %1746 = vmatmul.mubr.msk.f32.vlgmr.msra.gmra.mrb[0].mxu0 %vm419_vm1, %v407_v14 }
  0x13   : > { %1757 = vmatmul.mubr.msk.f32.vlgmr.msra.gmra.mrb[0].mxu1 %vm419_vm1, %v2032_v15  ;;  %1761 = vmatprep.mubr.msk.f32.mxu0 %vm1908_vm0, %v1909_v6 }
  0x14   : > { %1766 = vmatprep.mubr.msk.f32.mxu1 %vm1908_vm0, %v1909_v6 }
  0xe5   : > { %v489_v17 = vpop.f32.mrb[0].mxu0 }
  0xe6   : > { %v490_v18 = vadd.f32 %v1678_v16, %v489_v17  ;;  %v1747_v19 = vpop.f32.mrb[1].mxu0  ;;  %v577_v20 = vpop.f32.mrb[0].mxu1 }
  0xe7   : > { %v1758_v21 = vpop.f32.mrb[1].mxu1  ;;  %v2051_v24 = vadd.f32 %v1680_v22, %v577_v20  ;;  %v584_v19 = vld [vmem:[%s2163_s6 + $0x10] sm:$0xff] }
  0xe8   : > { %494 = vst.msk [vmem:[#allocation2] sm:$0xff] %vm493_vm2, %v490_v18 }
  0xef   : > { %v2049_v23 = vld [vmem:[#allocation2] sm:$0xff] }
  0xf0   : > { %753 = vrot.lane.b32.xlu0 %v2049_v23, %s1910_s27  ;;  %1760 = vmatpush3.xpose.msk.msra.mxu0 %vm586_vm3, %v2049_v23 }
  0xf1   : > { %1769 = vmatprep.subr.mxu0 %v1909_v6 }
  0xf3   : > { %1762 = vmatmul.mubr.msk.f32.vlgmr.msra.gmra.mrb[2].mxu0 %vm586_vm3, %v2051_v24 }
  0xf4   : > { %751 = vrot.lane.b32.xlu0 %v2051_v24, %s1910_s27  ;;  %1771 = vmatprep.mubr.msk.f32.mxu0 %vm1908_vm0, %v1909_v6 }
 0x162   : > { %v754_v25 = vpop.permute.xlu0 %753 }
 0x163   : > { %1770 = vmatpush3.xpose.msk.msra.mxu0 %vm586_vm3, %v754_v25 }
 0x164   : > { %1779 = vmatprep.subr.mxu0 %v1909_v6 }
 0x166   : > { %v752_v26 = vpop.permute.xlu0 %751 }
 0x167   : > { %1772 = vmatmul.mubr.msk.f32.vlgmr.msra.gmra.mrb[4].mxu0 %vm586_vm3, %v752_v26 }
 0x168   : > { %1781 = vmatprep.mubr.msk.f32.mxu0 %vm1908_vm0, %v1909_v6  ;;  %1780 = vmatpush3.msra.mxu0 %v583_v49 }
 0x169   : > { %1789 = vmatprep.subr.mxu0 %v1909_v6 }
 0x1c6   : > { %v659_v27 = vpop.f32.mrb[2].mxu0 }
 0x1c7   : > { %v663_v28 = vmul.f32 0.35355338, %v659_v27  ;;  %v1763_v29 = vpop.f32.mrb[3].mxu0 }
 0x1c9   : > { %v664_v30 = vsel %vm586_vm3, %v663_v28, -inf }
 0x1ca   : > { %665 = vmax.xlane.f32.xlu1 %v664_v30 }
 0x23a   : > { %v825_v31 = vpop.f32.mrb[4].mxu0 }
 0x23b   : > { %v829_v32 = vmul.f32 0.35355338, %v825_v31  ;;  %v1773_v33 = vpop.f32.mrb[5].mxu0 }
 0x23d   : > { %v830_v34 = vsel %vm586_vm3, %v829_v32, -inf }
 0x23e   : > { %831 = vmax.xlane.f32.xlu1 %v830_v34 }
 0x24f   : > { %675 = vrot.lane.b32.xlu1 %v2049_v23, %s1911_s28 }
 0x257   : > { %v666_v35 = vpop.xlane.xlu1 %665 }
 0x258   : > { %v667_v36 = vsub.f32 %v663_v28, %v666_v35 }
 0x25a   : > { %v668_v37 = vmul.f32 1.442695, %v667_v36 }
 0x25c   : > { %1865 = vpow2.f32 %v668_v37 }
 0x266   : > { %v1866_v38 = vpop.eup %1865 }
 0x267   : > { %v670_v39 = vsel %vm586_vm3, %v1866_v38, 0.0 }
 0x268   : > { %671 = vadd.xlane.f32.xlu0 %v670_v39 }
 0x2cb   : > { %v832_v40 = vpop.xlane.xlu1 %831 }
 0x2cc   : > { %v833_v41 = vsub.f32 %v829_v32, %v832_v40 }
 0x2ce   : > { %v834_v42 = vmul.f32 1.442695, %v833_v41 }
 0x2cf   : > { %v676_v43 = vpop.permute.xlu1 %675 }
 0x2d0   : > { %1867 = vpow2.f32 %v834_v42  ;;  %1765 = vmatpush3.msra.mxu1 %v676_v43  ;;  %v1698_v43 = vld [vmem:[%s2164_s7] ss:$0 sm:$0xff] }
 0x2d1   : > { %1774 = vmatprep.subr.mxu1 %v1909_v6 }
 0x2da   : > { %v1868_v44 = vpop.eup %1867 }
 0x2db   : > { %v836_v45 = vsel %vm586_vm3, %v1868_v44, 0.0 }
 0x2dc   : > { %837 = vadd.xlane.f32.xlu1 %v836_v45 }
 0x2ed   : > { %841 = vrot.lane.b32.xlu1 %v2049_v23, %s1912_s29 }
 0x2f1   : > { %1065 = vrot.lane.b32.xlu1 %v2049_v23, %s1913_s30 }
 0x2f5   : > { %v672_v46 = vpop.xlane.xlu0 %671  ;;  %1063 = vrot.lane.b32.xlu1 %v2051_v24, %s1913_s30 }
 0x2f6   : > { %1869 = vrcp.f32 %v672_v46 }
 0x300   : > { %v1870_v47 = vpop.eup %1869 }
 0x301   : > { %v674_v48 = vmul.f32 %v1870_v47, %v1866_v38 }
 0x303   : > { %1767 = vmatmul.mubr.msk.f32.vlgmr.msra.gmra.mrb[2].mxu1 %vm586_vm3, %v674_v48 }
 0x304   : > { %1776 = vmatprep.mubr.msk.f32.mxu1 %vm1908_vm0, %v1909_v6 }
 0x369   : > { %v838_v50 = vpop.xlane.xlu1 %837 }
 0x36a   : > { %1871 = vrcp.f32 %v838_v50 }
 0x36d   : > { %v842_v51 = vpop.permute.xlu1 %841 }
 0x36e   : > { %1775 = vmatpush3.msra.mxu1 %v842_v51 }
 0x36f   : > { %1784 = vmatprep.subr.mxu1 %v1909_v6 }
 0x371   : > { %v1066_v57 = vpop.permute.xlu1 %1065 }
 0x374   : > { %v1872_v52 = vpop.eup %1871 }
 0x375   : > { %v840_v53 = vmul.f32 %v1872_v52, %v1868_v44  ;;  %v1064_v60 = vpop.permute.xlu1 %1063 }
 0x377   : > { %1777 = vmatmul.mubr.msk.f32.vlgmr.msra.gmra.mrb[4].mxu1 %vm586_vm3, %v840_v53 }
 0x378   : > { %1785 = vmatpush3.msra.mxu1 %v582_v54  ;;  %1786 = vmatprep.mubr.msk.f32.mxu1 %vm1908_vm0, %v1909_v6 }
 0x379   : > { %1794 = vmatprep.subr.mxu1 %v1909_v6 }
 0x3d6   : > { %v747_v55 = vpop.f32.mrb[2].mxu1 }
 0x3d7   : > { %v1768_v56 = vpop.f32.mrb[3].mxu1  ;;  %1787 = vmatmul.mubr.msk.f32.vlgmr.msra.gmra.mrb[6].mxu1 %vm586_vm3, %v747_v55 }
 0x3d8   : > { %1796 = vmatprep.mubr.msk.f32.mxu1 %vm1908_vm0, %v1909_v6 }
 0x44a   : > { %v913_v58 = vpop.f32.mrb[4].mxu1 }
 0x44b   : > { %v1778_v59 = vpop.f32.mrb[5].mxu1  ;;  %1782 = vmatmul.mubr.msk.f32.vlgmr.msra.gmra.mrb[6].mxu0 %vm586_vm3, %v913_v58 }
 0x44c   : > { %1790 = vmatpush3.xpose.msk.msra.mxu0 %vm586_vm3, %v1066_v57  ;;  %1791 = vmatprep.mubr.msk.f32.mxu0 %vm1908_vm0, %v1909_v6  ;;  %v1700_v59 = vld [vmem:[%s2166_s9] ss:$0 sm:$0xff] }
 0x44d   : > { %1799 = vmatprep.subr.mxu0 %v1909_v6 }
 0x44f   : > { %1792 = vmatmul.mubr.msk.f32.vlgmr.msra.gmra.mrb[8].mxu0 %vm586_vm3, %v1064_v60 }
 0x450   : > { %1801 = vmatprep.mubr.msk.f32.mxu0 %vm1908_vm0, %v1909_v6  ;;  %1800 = vmatpush3.msra.mxu0 %v584_v19 }
 0x451   : > { %1809 = vmatprep.subr.mxu0 %v1909_v6 }
 0x4aa   : > { %v1059_v61 = vpop.f32.mrb[6].mxu1 }
 0x4ab   : > { %v1788_v62 = vpop.f32.mrb[7].mxu1 }
 0x51e   : > { %v986_v63 = vpop.f32.mrb[6].mxu0 }
 0x51f   : > { %v1060_v0 = vadd.f32 %v1059_v61, %v986_v63  ;;  %v1783_v1 = vpop.f32.mrb[7].mxu0 }
 0x522   : > { %v1137_v2 = vpop.f32.mrb[8].mxu0 }
 0x523   : > { %v1141_v3 = vmul.f32 0.35355338, %v1137_v2  ;;  %v1793_v4 = vpop.f32.mrb[9].mxu0 }
 0x525   : > { %v1142_v5 = vsel %vm586_vm3, %v1141_v3, -inf }
 0x526   : > { %1143 = vmax.xlane.f32.xlu0 %v1142_v5 }
 0x53c   : > { %1153 = vrot.lane.b32.xlu0 %v2049_v23, %s1914_s20 }
 0x540   : > { %1305 = vrot.lane.b32.xlu0 %v2049_v23, %s1915_s21 }
 0x544   : > { %1303 = vrot.lane.b32.xlu0 %v2051_v24, %s1915_s21 }
 0x5b3   : > { %v1144_v7 = vpop.xlane.xlu0 %1143 }
 0x5b4   : > { %v1145_v8 = vsub.f32 %v1141_v3, %v1144_v7 }
 0x5b6   : > { %v1146_v9 = vmul.f32 1.442695, %v1145_v8 }
 0x5b7   : > { %v1154_v10 = vpop.permute.xlu0 %1153 }
 0x5b8   : > { %1873 = vpow2.f32 %v1146_v9  ;;  %1795 = vmatpush3.msra.mxu1 %v1154_v10 }
 0x5b9   : > { %1804 = vmatprep.subr.mxu1 %v1909_v6 }
 0x5bb   : > { %v1306_v16 = vpop.permute.xlu0 %1305 }
 0x5bf   : > { %v1304_v18 = vpop.permute.xlu0 %1303 }
 0x5c2   : > { %v1874_v11 = vpop.eup %1873 }
 0x5c3   : > { %v1148_v12 = vsel %vm586_vm3, %v1874_v11, 0.0 }
 0x5c4   : > { %1149 = vadd.xlane.f32.xlu1 %v1148_v12 }
 0x651   : > { %v1150_v13 = vpop.xlane.xlu1 %1149 }
 0x652   : > { %1875 = vrcp.f32 %v1150_v13 }
 0x65c   : > { %v1876_v14 = vpop.eup %1875 }
 0x65d   : > { %v1152_v17 = vmul.f32 %v1876_v14, %v1874_v11 }
 0x65f   : > { %1797 = vmatmul.mubr.msk.f32.vlgmr.msra.gmra.mrb[8].mxu1 %vm586_vm3, %v1152_v17 }
 0x660   : > { %1805 = vmatpush3.xpose.msk.msra.mxu1 %vm586_vm3, %v1306_v16  ;;  %1806 = vmatprep.mubr.msk.f32.mxu1 %vm1908_vm0, %v1909_v6 }
 0x661   : > { %1814 = vmatprep.subr.mxu1 %v1909_v6 }
 0x663   : > { %1807 = vmatmul.mubr.msk.f32.vlgmr.msra.gmra.mrb[10].mxu1 %vm586_vm3, %v1304_v18 }
 0x664   : > { %1816 = vmatprep.mubr.msk.f32.mxu1 %vm1908_vm0, %v1909_v6 }
 0x732   : > { %v1225_v20 = vpop.f32.mrb[8].mxu1 }
 0x733   : > { %v1798_v21 = vpop.f32.mrb[9].mxu1  ;;  %1802 = vmatmul.mubr.msk.f32.vlgmr.msra.gmra.mrb[10].mxu0 %vm586_vm3, %v1225_v20 }
 0x734   : > { %1811 = vmatprep.mubr.msk.f32.mxu0 %vm1908_vm0, %v1909_v6  ;;  %v585_v6 = vld [vmem:[%s2163_s6 + $0x18] sm:$0xff] }
 0x735   : > { %1815 = vmatpush3.msra.mxu1 %v585_v6 }
 0x736   : > { %v1377_v22 = vpop.f32.mrb[10].mxu1 }
 0x737   : > { %v1381_v24 = vmul.f32 0.35355338, %v1377_v22  ;;  %v1808_v25 = vpop.f32.mrb[11].mxu1 }
 0x739   : > { %v1382_v26 = vsel %vm586_vm3, %v1381_v24, -inf }
 0x73a   : > { %1383 = vmax.xlane.f32.xlu0 %v1382_v26 }
 0x7c7   : > { %v1384_v27 = vpop.xlane.xlu0 %1383 }
 0x7c8   : > { %v1385_v28 = vsub.f32 %v1381_v24, %v1384_v27 }
 0x7ca   : > { %v1386_v29 = vmul.f32 1.442695, %v1385_v28 }
 0x7cc   : > { %1877 = vpow2.f32 %v1386_v29 }
 0x7d6   : > { %v1878_v30 = vpop.eup %1877 }
 0x7d7   : > { %v1388_v31 = vsel %vm586_vm3, %v1878_v30, 0.0 }
 0x7d8   : > { %1389 = vadd.xlane.f32.xlu1 %v1388_v31 }
 0x7e9   : > { %1393 = vrot.lane.b32.xlu1 %v2049_v23, %s1916_s13 }
 0x806   : > { %v1298_v32 = vpop.f32.mrb[10].mxu0 }
 0x807   : > { %v1302_v33 = vadd.f32 %v1298_v32, %v1060_v0  ;;  %v1803_v34 = vpop.f32.mrb[11].mxu0 }
 0x865   : > { %v1390_v35 = vpop.xlane.xlu1 %1389 }
 0x866   : > { %1879 = vrcp.f32 %v1390_v35 }
 0x869   : > { %v1394_v36 = vpop.permute.xlu1 %1393 }
 0x86a   : > { %1810 = vmatpush3.msra.mxu0 %v1394_v36 }
 0x870   : > { %v1880_v37 = vpop.eup %1879 }
 0x871   : > { %v1392_v38 = vmul.f32 %v1880_v37, %v1878_v30 }
 0x873   : > { %1812 = vmatmul.mubr.msk.f32.vlgmr.msra.gmra.mrb[12].mxu0 %vm586_vm3, %v1392_v38 }
 0x946   : > { %v1465_v39 = vpop.f32.mrb[12].mxu0 }
 0x947   : > { %v1813_v40 = vpop.f32.mrb[13].mxu0  ;;  %1817 = vmatmul.mubr.msk.f32.vlgmr.msra.gmra.mrb[12].mxu1 %vm586_vm3, %v1465_v39 }
 0xa1a   : > { %v1538_v23 = vpop.f32.mrb[12].mxu1 }
 0xa1b   : > { %v1542_v41 = vadd.f32 %v1538_v23, %v1302_v33  ;;  %v1818_v42 = vpop.f32.mrb[13].mxu1 }
 0xa1d   : > { %v1543_v44 = vadd.f32 %v1542_v41, %v2032_v15  ;;  %v1699_v15 = vld [vmem:[%s2165_s8] ss:$0 sm:$0xff] }
 0xa1f   : > { %v1551_v45 = vadd.f32 %v1698_v43, %v1543_v44 }
 0xa21   : > { %v1554_v46 = vsel %vm419_vm1, %v1551_v45, 0.0  ;;  %v1557_v47 = vmul.f32 %v1551_v45, %v1551_v45 }
 0xa22   : > { %1555 = vadd.xlane.f32.xlu1 %v1554_v46 }
 0xa23   : > { %v1558_v48 = vsel %vm419_vm1, %v1557_v47, 0.0 }
 0xa24   : > { %1559 = vadd.xlane.f32.xlu0 %v1558_v48 }
 0xaaf   : > { %v1556_v49 = vpop.xlane.xlu1 %1555 }
 0xab0   : > { %v1561_v50 = vmul.f32 0.03125, %v1556_v49 }
 0xab1   : > { %v1560_v51 = vpop.xlane.xlu0 %1559 }
 0xab2   : > { %v1563_v52 = vmul.f32 %v1561_v50, %v1561_v50  ;;  %v1562_v53 = vmul.f32 0.03125, %v1560_v51  ;;  %v1565_v56 = vsub.f32 %v1551_v45, %v1561_v50 }
 0xab4   : > { %v1564_v54 = vsub.f32 %v1562_v53, %v1563_v52 }
 0xab6   : > { %v1566_v55 = vadd.f32 1e-05, %v1564_v54 }
 0xab8   : > { %1881 = vrsqrt.f32 %v1566_v55 }
 0xac2   : > { %v1882_v57 = vpop.eup %1881 }
 0xac3   : > { %v1568_v58 = vmul.f32 %v1882_v57, %v1565_v56 }
 0xac5   : > { %v1575_v60 = vmul.f32 %v1699_v15, %v1568_v58 }
 0xac7   : > { %v1582_v61 = vadd.f32 %v1700_v59, %v1575_v60 }
 0xac9   : > { %1583 = vst.msk [vmem:[%s402_s19] sm:$0xff] %vm419_vm1, %v1582_v61 }
 0xaca PF: > { %s20_s15 = sadd.s32 1, %s1905_s15   ;;  %s2168_s13 = smov %s1901_s14 }
 0xacb   : > { %p17_p5 = scmp.ge.s32.totalorder %s20_s15, 4   ;;  %s2169_s14 = smov %s2171_s16 }
 0xacd   :  { %19 = sbr.rel (!%p17_p5) target bundleno = 2 (0x2), region = 97 }

</bundles_post_ra>
